<compile_context>
chip_gen: v7x
topology: tpu7x:2x2x1
jax: 0.10.0
libtpu: 0.0.40
codegen_flags: <defaults>
</compile_context>

<pallas_src>
import jax
import jax.numpy as jnp
from jax.experimental import pallas as pl
from jax.experimental.pallas import tpu as pltpu

# ------------------------------ config -------------------------------------
IMG = 16          # input spatial size
CIN = 3           # input channels
PATCH = 8         # patch size -> N = (IMG/PATCH)^2 = 4 patches
D = 32            # hidden dim
HEADS = 2
DH = D // HEADS
MLP = 4 * D
DEPTH = 2
N_PATCH = (IMG // PATCH) ** 2
T = N_PATCH + 1   # tokens (cls + patches)
KP = CIN * PATCH * PATCH
LN_EPS = 1e-6     # timm ViT eps (PyTorch nn.LayerNorm default would be 1e-5)


# --------------------------- fused Pallas kernel ----------------------------
def _layernorm(x, g, b):
    mu = jnp.mean(x, axis=-1, keepdims=True)
    var = jnp.mean((x - mu) ** 2, axis=-1, keepdims=True)
    return (x - mu) * jax.lax.rsqrt(var + LN_EPS) * g + b


def _kaiko_fused_kernel(
    patches_ref,                       # (1, N_PATCH, KP)   per-image patch slab
    w_patch_ref, b_patch_ref,          # (KP, D), (1, D)
    cls_ref, pos_ref,                  # (1, D), (T, D)
    ln1_g_ref, ln1_b_ref,              # (DEPTH, D)
    w_qkv_ref, b_qkv_ref,              # (DEPTH, D, 3D), (DEPTH, 3D)
    w_proj_ref, b_proj_ref,            # (DEPTH, D, D), (DEPTH, D)
    ln2_g_ref, ln2_b_ref,              # (DEPTH, D)
    w_fc1_ref, b_fc1_ref,              # (DEPTH, D, MLP), (DEPTH, MLP)
    w_fc2_ref, b_fc2_ref,              # (DEPTH, MLP, D), (DEPTH, D)
    lnf_g_ref, lnf_b_ref,              # (1, D)
    o_ref,                             # (1, 2, D)  [cls ; mean(patch tokens)]
):
    # ---- patch embedding: (N, KP) @ (KP, D) + b ----
    patches = patches_ref[0].astype(jnp.float32)
    tok_p = jnp.dot(patches, w_patch_ref[...],
                    preferred_element_type=jnp.float32) + b_patch_ref[...]

    # ---- prepend cls token, add positional embedding -> (T, D) ----
    x = jnp.concatenate([cls_ref[...], tok_p], axis=0) + pos_ref[...]

    scale = 1.0 / (DH ** 0.5)

    # DEPTH is small & static: unrolled Python loop; all weights/activations
    # stay VMEM-resident for the whole grid step.
    for d in range(DEPTH):
        # ---------------- attention ----------------
        y = _layernorm(x, ln1_g_ref[d:d + 1], ln1_b_ref[d:d + 1])
        qkv = jnp.dot(y, w_qkv_ref[d],
                      preferred_element_type=jnp.float32) + b_qkv_ref[d:d + 1]
        heads = []
        for h in range(HEADS):
            q = qkv[:, h * DH:(h + 1) * DH]                    # (T, DH)
            k = qkv[:, D + h * DH:D + (h + 1) * DH]
            v = qkv[:, 2 * D + h * DH:2 * D + (h + 1) * DH]
            s = jnp.dot(q, k.T, preferred_element_type=jnp.float32) * scale
            m = jnp.max(s, axis=-1, keepdims=True)
            p = jnp.exp(s - m)
            p = p * pl.reciprocal(jnp.sum(p, axis=-1, keepdims=True), approx=True)
            heads.append(jnp.dot(p, v, preferred_element_type=jnp.float32))
        a = jnp.concatenate(heads, axis=-1)                    # (T, D)
        a = jnp.dot(a, w_proj_ref[d],
                    preferred_element_type=jnp.float32) + b_proj_ref[d:d + 1]
        x = x + a

        # ---------------- MLP ----------------
        y = _layernorm(x, ln2_g_ref[d:d + 1], ln2_b_ref[d:d + 1])
        # NOTE: tanh-approx GELU (PyTorch nn.GELU default is exact erf).
        hdn = jnp.dot(y, w_fc1_ref[d],
                      preferred_element_type=jnp.float32) + b_fc1_ref[d:d + 1]
        hdn = jax.nn.gelu(hdn, approximate=True)
        hdn = jnp.dot(hdn, w_fc2_ref[d],
                      preferred_element_type=jnp.float32) + b_fc2_ref[d:d + 1]
        x = x + hdn

    # ---- final LayerNorm + Kaiko embedding (cls ++ mean of patch tokens) ----
    x = _layernorm(x, lnf_g_ref[...], lnf_b_ref[...])
    cls_out = x[0:1, :]                                        # (1, D)
    patch_mean = jnp.mean(x[1:, :], axis=0, keepdims=True)     # (1, D)
    o_ref[0] = jnp.concatenate([cls_out, patch_mean], axis=0).astype(o_ref.dtype)


# ----------------------- synthetic ViT parameters ---------------------------
def init_params(key):
    def nrm(k, shape, scale=0.02):
        return (scale * jax.random.normal(k, shape)).astype(jnp.float32)

    keys = iter(jax.random.split(key, 8))
    return {
        "w_patch": nrm(next(keys), (KP, D)),
        "b_patch": jnp.zeros((1, D), jnp.float32),
        "cls_token": nrm(next(keys), (1, D)),
        "pos_embed": nrm(next(keys), (T, D)),
        # per-block parameters stacked along a leading DEPTH axis
        "ln1_g": jnp.ones((DEPTH, D), jnp.float32),
        "ln1_b": jnp.zeros((DEPTH, D), jnp.float32),
        "w_qkv": nrm(next(keys), (DEPTH, D, 3 * D)),
        "b_qkv": jnp.zeros((DEPTH, 3 * D), jnp.float32),
        "w_proj": nrm(next(keys), (DEPTH, D, D)),
        "b_proj": jnp.zeros((DEPTH, D), jnp.float32),
        "ln2_g": jnp.ones((DEPTH, D), jnp.float32),
        "ln2_b": jnp.zeros((DEPTH, D), jnp.float32),
        "w_fc1": nrm(next(keys), (DEPTH, D, MLP)),
        "b_fc1": jnp.zeros((DEPTH, MLP), jnp.float32),
        "w_fc2": nrm(next(keys), (DEPTH, MLP, D)),
        "b_fc2": jnp.zeros((DEPTH, D), jnp.float32),
        "ln_g": jnp.ones((1, D), jnp.float32),
        "ln_b": jnp.zeros((1, D), jnp.float32),
    }


# ----------------------------- forward pass ---------------------------------
def kaiko_forward(params, x):
    """Kaiko.forward with resize=None, out_indices=None, concat_mean_patch_tokens=True.

    x: NCHW [B, C, H, W] -> embedding [B, 2D] = cls ++ mean(patch tokens).
    """
    B, C, H, W = x.shape
    Hp, Wp = H // PATCH, W // PATCH
    n = Hp * Wp
    # patchify (glue / conv-unfold): NCHW -> [B, N, C*P*P]
    patches = x.reshape(B, C, Hp, PATCH, Wp, PATCH)
    patches = patches.transpose(0, 2, 4, 1, 3, 5).reshape(B, n, C * PATCH * PATCH)

    def full(*shape):
        return pl.BlockSpec(shape, lambda b, _s=shape: (0,) * len(_s))

    out = pl.pallas_call(
        _kaiko_fused_kernel,
        out_shape=jax.ShapeDtypeStruct((B, 2, D), x.dtype),
        grid=(B,),
        in_specs=[
            pl.BlockSpec((1, n, C * PATCH * PATCH), lambda b: (b, 0, 0)),
            full(KP, D), full(1, D),
            full(1, D), full(T, D),
            full(DEPTH, D), full(DEPTH, D),
            full(DEPTH, D, 3 * D), full(DEPTH, 3 * D),
            full(DEPTH, D, D), full(DEPTH, D),
            full(DEPTH, D), full(DEPTH, D),
            full(DEPTH, D, MLP), full(DEPTH, MLP),
            full(DEPTH, MLP, D), full(DEPTH, D),
            full(1, D), full(1, D),
        ],
        out_specs=pl.BlockSpec((1, 2, D), lambda b: (b, 0, 0)),
        compiler_params=pltpu.CompilerParams(
            dimension_semantics=("parallel",)),   # megacore split on v7x
    )(
        patches,
        params["w_patch"], params["b_patch"],
        params["cls_token"], params["pos_embed"],
        params["ln1_g"], params["ln1_b"],
        params["w_qkv"], params["b_qkv"],
        params["w_proj"], params["b_proj"],
        params["ln2_g"], params["ln2_b"],
        params["w_fc1"], params["b_fc1"],
        params["w_fc2"], params["b_fc2"],
        params["ln_g"], params["ln_b"],
    )
    # (B, 2, D) -> (B, 2D): concat(cls, mean_patch) along features (free reshape).
    return out.reshape(B, 2 * D)


# --------------------------------- main -------------------------------------
if __name__ == "__main__":
    key = jax.random.PRNGKey(0)
    pkey, xkey = jax.random.split(key)
    params = init_params(pkey)
    x = jax.random.normal(xkey, (2, CIN, IMG, IMG), dtype=jnp.float32)

    emb = jax.jit(kaiko_forward)(params, x)
    emb = jax.block_until_ready(emb)
    assert emb.shape == (2, 2 * D), emb.shape
    assert bool(jnp.all(jnp.isfinite(emb)))
    print("KERNEL_OK")
</pallas_src>

<mosaic_0001>
module attributes {stable_mosaic.version = 11 : i64} {
  func.func @_kaiko_fused_kernel(%arg0: i32, %arg1: memref<1x4x192xf32, #tpu.memory_space<vmem>>, %arg2: memref<192x32xf32, #tpu.memory_space<vmem>>, %arg3: memref<1x32xf32, #tpu.memory_space<vmem>>, %arg4: memref<1x32xf32, #tpu.memory_space<vmem>>, %arg5: memref<5x32xf32, #tpu.memory_space<vmem>>, %arg6: memref<2x32xf32, #tpu.memory_space<vmem>>, %arg7: memref<2x32xf32, #tpu.memory_space<vmem>>, %arg8: memref<2x32x96xf32, #tpu.memory_space<vmem>>, %arg9: memref<2x96xf32, #tpu.memory_space<vmem>>, %arg10: memref<2x32x32xf32, #tpu.memory_space<vmem>>, %arg11: memref<2x32xf32, #tpu.memory_space<vmem>>, %arg12: memref<2x32xf32, #tpu.memory_space<vmem>>, %arg13: memref<2x32xf32, #tpu.memory_space<vmem>>, %arg14: memref<2x32x128xf32, #tpu.memory_space<vmem>>, %arg15: memref<2x128xf32, #tpu.memory_space<vmem>>, %arg16: memref<2x128x32xf32, #tpu.memory_space<vmem>>, %arg17: memref<2x32xf32, #tpu.memory_space<vmem>>, %arg18: memref<1x32xf32, #tpu.memory_space<vmem>>, %arg19: memref<1x32xf32, #tpu.memory_space<vmem>>, %arg20: memref<1x2x32xf32, #tpu.memory_space<vmem>>) attributes {dimension_semantics = [#tpu.dimension_semantics<parallel>], iteration_bounds = array<i64: 2>, scalar_prefetch = 0 : i64, scratch_operands = 0 : i64, tpu.core_type = #tpu.core_type<tc>, window_params = [{transform_indices = @transform_0, window_bounds = array<i64: 1, 4, 192>}, {pipeline_mode = #tpu.pipeline_mode<synchronous>, transform_indices = @transform_1, window_bounds = array<i64: 192, 32>}, {pipeline_mode = #tpu.pipeline_mode<synchronous>, transform_indices = @transform_2, window_bounds = array<i64: 1, 32>}, {pipeline_mode = #tpu.pipeline_mode<synchronous>, transform_indices = @transform_3, window_bounds = array<i64: 1, 32>}, {pipeline_mode = #tpu.pipeline_mode<synchronous>, transform_indices = @transform_4, window_bounds = array<i64: 5, 32>}, {pipeline_mode = #tpu.pipeline_mode<synchronous>, transform_indices = @transform_5, window_bounds = array<i64: 2, 32>}, {pipeline_mode = #tpu.pipeline_mode<synchronous>, transform_indices = @transform_6, window_bounds = array<i64: 2, 32>}, {pipeline_mode = #tpu.pipeline_mode<synchronous>, transform_indices = @transform_7, window_bounds = array<i64: 2, 32, 96>}, {pipeline_mode = #tpu.pipeline_mode<synchronous>, transform_indices = @transform_8, window_bounds = array<i64: 2, 96>}, {pipeline_mode = #tpu.pipeline_mode<synchronous>, transform_indices = @transform_9, window_bounds = array<i64: 2, 32, 32>}, {pipeline_mode = #tpu.pipeline_mode<synchronous>, transform_indices = @transform_10, window_bounds = array<i64: 2, 32>}, {pipeline_mode = #tpu.pipeline_mode<synchronous>, transform_indices = @transform_11, window_bounds = array<i64: 2, 32>}, {pipeline_mode = #tpu.pipeline_mode<synchronous>, transform_indices = @transform_12, window_bounds = array<i64: 2, 32>}, {pipeline_mode = #tpu.pipeline_mode<synchronous>, transform_indices = @transform_13, window_bounds = array<i64: 2, 32, 128>}, {pipeline_mode = #tpu.pipeline_mode<synchronous>, transform_indices = @transform_14, window_bounds = array<i64: 2, 128>}, {pipeline_mode = #tpu.pipeline_mode<synchronous>, transform_indices = @transform_15, window_bounds = array<i64: 2, 128, 32>}, {pipeline_mode = #tpu.pipeline_mode<synchronous>, transform_indices = @transform_16, window_bounds = array<i64: 2, 32>}, {pipeline_mode = #tpu.pipeline_mode<synchronous>, transform_indices = @transform_17, window_bounds = array<i64: 1, 32>}, {pipeline_mode = #tpu.pipeline_mode<synchronous>, transform_indices = @transform_18, window_bounds = array<i64: 1, 32>}, {transform_indices = @transform_19, window_bounds = array<i64: 1, 2, 32>}]} {
    %c0 = arith.constant 0 : index
    %c0_0 = arith.constant 0 : index
    %c0_1 = arith.constant 0 : index
    %0 = vector.load %arg1[%c0, %c0_0, %c0_1] : memref<1x4x192xf32, #tpu.memory_space<vmem>>, vector<1x4x192xf32>
    %1 = vector.shape_cast %0 : vector<1x4x192xf32> to vector<4x192xf32>
    %c0_2 = arith.constant 0 : index
    %c0_3 = arith.constant 0 : index
    %2 = vector.load %arg2[%c0_2, %c0_3] : memref<192x32xf32, #tpu.memory_space<vmem>>, vector<192x32xf32>
    %cst = arith.constant dense<0.000000e+00> : vector<4x32xf32>
    %3 = tpu.matmul %1, %2, %cst {dimension_numbers = #tpu.dot_dimension_numbers<[1], [0], [0], [1], [0, 0, 1, 1], [], []>} : vector<4x192xf32>, vector<192x32xf32>, vector<4x32xf32> -> vector<4x32xf32>
    %c0_4 = arith.constant 0 : index
    %c0_5 = arith.constant 0 : index
    %4 = vector.load %arg3[%c0_4, %c0_5] : memref<1x32xf32, #tpu.memory_space<vmem>>, vector<1x32xf32>
    %5 = vector.broadcast %4 : vector<1x32xf32> to vector<4x32xf32>
    %6 = arith.addf %3, %5 : vector<4x32xf32>
    %c0_6 = arith.constant 0 : index
    %c0_7 = arith.constant 0 : index
    %7 = vector.load %arg4[%c0_6, %c0_7] : memref<1x32xf32, #tpu.memory_space<vmem>>, vector<1x32xf32>
    %8 = tpu.concatenate %7, %6 in 0 : vector<1x32xf32>, vector<4x32xf32> -> vector<5x32xf32>
    %c0_8 = arith.constant 0 : index
    %c0_9 = arith.constant 0 : index
    %9 = vector.load %arg5[%c0_8, %c0_9] : memref<5x32xf32, #tpu.memory_space<vmem>>, vector<5x32xf32>
    %10 = arith.addf %8, %9 : vector<5x32xf32>
    %c0_10 = arith.constant 0 : index
    %c0_11 = arith.constant 0 : index
    %11 = vector.load %arg6[%c0_10, %c0_11] : memref<2x32xf32, #tpu.memory_space<vmem>>, vector<1x32xf32>
    %c0_12 = arith.constant 0 : index
    %c0_13 = arith.constant 0 : index
    %12 = vector.load %arg7[%c0_12, %c0_13] : memref<2x32xf32, #tpu.memory_space<vmem>>, vector<1x32xf32>
    %cst_14 = arith.constant dense<0.000000e+00> : vector<5xf32>
    %13 = vector.multi_reduction <add>, %10, %cst_14 [1] : vector<5x32xf32> to vector<5xf32>
    %14 = vector.shape_cast %13 : vector<5xf32> to vector<5x1xf32>
    %cst_15 = arith.constant 3.200000e+01 : f32
    %15 = vector.broadcast %cst_15 : f32 to vector<5x1xf32>
    %16 = arith.divf %14, %15 : vector<5x1xf32>
    %17 = vector.broadcast %16 : vector<5x1xf32> to vector<5x32xf32>
    %18 = arith.subf %10, %17 : vector<5x32xf32>
    %19 = arith.mulf %18, %18 : vector<5x32xf32>
    %cst_16 = arith.constant dense<0.000000e+00> : vector<5xf32>
    %20 = vector.multi_reduction <add>, %19, %cst_16 [1] : vector<5x32xf32> to vector<5xf32>
    %21 = vector.shape_cast %20 : vector<5xf32> to vector<5x1xf32>
    %cst_17 = arith.constant 3.200000e+01 : f32
    %22 = vector.broadcast %cst_17 : f32 to vector<5x1xf32>
    %23 = arith.divf %21, %22 : vector<5x1xf32>
    %24 = vector.broadcast %16 : vector<5x1xf32> to vector<5x32xf32>
    %25 = arith.subf %10, %24 : vector<5x32xf32>
    %cst_18 = arith.constant 9.99999997E-7 : f32
    %26 = vector.broadcast %cst_18 : f32 to vector<5x1xf32>
    %27 = arith.addf %23, %26 : vector<5x1xf32>
    %28 = math.rsqrt %27 : vector<5x1xf32>
    %29 = vector.broadcast %28 : vector<5x1xf32> to vector<5x32xf32>
    %30 = arith.mulf %25, %29 : vector<5x32xf32>
    %31 = vector.broadcast %11 : vector<1x32xf32> to vector<5x32xf32>
    %32 = arith.mulf %30, %31 : vector<5x32xf32>
    %33 = vector.broadcast %12 : vector<1x32xf32> to vector<5x32xf32>
    %34 = arith.addf %32, %33 : vector<5x32xf32>
    %c0_19 = arith.constant 0 : index
    %c0_20 = arith.constant 0 : index
    %c0_21 = arith.constant 0 : index
    %35 = vector.load %arg8[%c0_19, %c0_20, %c0_21] : memref<2x32x96xf32, #tpu.memory_space<vmem>>, vector<1x32x96xf32>
    %36 = vector.shape_cast %35 : vector<1x32x96xf32> to vector<32x96xf32>
    %cst_22 = arith.constant dense<0.000000e+00> : vector<5x96xf32>
    %37 = tpu.matmul %34, %36, %cst_22 {dimension_numbers = #tpu.dot_dimension_numbers<[1], [0], [0], [1], [0, 0, 1, 1], [], []>} : vector<5x32xf32>, vector<32x96xf32>, vector<5x96xf32> -> vector<5x96xf32>
    %c0_23 = arith.constant 0 : index
    %c0_24 = arith.constant 0 : index
    %38 = vector.load %arg9[%c0_23, %c0_24] : memref<2x96xf32, #tpu.memory_space<vmem>>, vector<1x96xf32>
    %39 = vector.broadcast %38 : vector<1x96xf32> to vector<5x96xf32>
    %40 = arith.addf %37, %39 : vector<5x96xf32>
    %41 = vector.extract_strided_slice %40 {offsets = [0, 0], sizes = [5, 16], strides = [1, 1]} : vector<5x96xf32> to vector<5x16xf32>
    %42 = vector.extract_strided_slice %40 {offsets = [0, 32], sizes = [5, 16], strides = [1, 1]} : vector<5x96xf32> to vector<5x16xf32>
    %43 = vector.extract_strided_slice %40 {offsets = [0, 64], sizes = [5, 16], strides = [1, 1]} : vector<5x96xf32> to vector<5x16xf32>
    %44 = tpu.transpose %42, [1, 0] : vector<5x16xf32> -> vector<16x5xf32>
    %cst_25 = arith.constant dense<0.000000e+00> : vector<5x5xf32>
    %45 = tpu.matmul %41, %44, %cst_25 {dimension_numbers = #tpu.dot_dimension_numbers<[1], [0], [0], [1], [0, 0, 1, 1], [], []>} : vector<5x16xf32>, vector<16x5xf32>, vector<5x5xf32> -> vector<5x5xf32>
    %cst_26 = arith.constant 2.500000e-01 : f32
    %46 = vector.broadcast %cst_26 : f32 to vector<5x5xf32>
    %47 = arith.mulf %45, %46 : vector<5x5xf32>
    %cst_27 = arith.constant dense<0xFF800000> : vector<5xf32>
    %48 = vector.multi_reduction <maximumf>, %47, %cst_27 [1] : vector<5x5xf32> to vector<5xf32>
    %49 = vector.shape_cast %48 : vector<5xf32> to vector<5x1xf32>
    %50 = vector.broadcast %49 : vector<5x1xf32> to vector<5x5xf32>
    %51 = arith.subf %47, %50 : vector<5x5xf32>
    %52 = math.exp %51 : vector<5x5xf32>
    %cst_28 = arith.constant dense<0.000000e+00> : vector<5xf32>
    %53 = vector.multi_reduction <add>, %52, %cst_28 [1] : vector<5x5xf32> to vector<5xf32>
    %54 = vector.shape_cast %53 : vector<5xf32> to vector<5x1xf32>
    %55 = tpu.reciprocal %54 {approx = true} : vector<5x1xf32> -> vector<5x1xf32>
    %56 = vector.broadcast %55 : vector<5x1xf32> to vector<5x5xf32>
    %57 = arith.mulf %52, %56 : vector<5x5xf32>
    %cst_29 = arith.constant dense<0.000000e+00> : vector<5x16xf32>
    %58 = tpu.matmul %57, %43, %cst_29 {dimension_numbers = #tpu.dot_dimension_numbers<[1], [0], [0], [1], [0, 0, 1, 1], [], []>} : vector<5x5xf32>, vector<5x16xf32>, vector<5x16xf32> -> vector<5x16xf32>
    %59 = vector.extract_strided_slice %40 {offsets = [0, 16], sizes = [5, 16], strides = [1, 1]} : vector<5x96xf32> to vector<5x16xf32>
    %60 = vector.extract_strided_slice %40 {offsets = [0, 48], sizes = [5, 16], strides = [1, 1]} : vector<5x96xf32> to vector<5x16xf32>
    %61 = vector.extract_strided_slice %40 {offsets = [0, 80], sizes = [5, 16], strides = [1, 1]} : vector<5x96xf32> to vector<5x16xf32>
    %62 = tpu.transpose %60, [1, 0] : vector<5x16xf32> -> vector<16x5xf32>
    %cst_30 = arith.constant dense<0.000000e+00> : vector<5x5xf32>
    %63 = tpu.matmul %59, %62, %cst_30 {dimension_numbers = #tpu.dot_dimension_numbers<[1], [0], [0], [1], [0, 0, 1, 1], [], []>} : vector<5x16xf32>, vector<16x5xf32>, vector<5x5xf32> -> vector<5x5xf32>
    %cst_31 = arith.constant 2.500000e-01 : f32
    %64 = vector.broadcast %cst_31 : f32 to vector<5x5xf32>
    %65 = arith.mulf %63, %64 : vector<5x5xf32>
    %cst_32 = arith.constant dense<0xFF800000> : vector<5xf32>
    %66 = vector.multi_reduction <maximumf>, %65, %cst_32 [1] : vector<5x5xf32> to vector<5xf32>
    %67 = vector.shape_cast %66 : vector<5xf32> to vector<5x1xf32>
    %68 = vector.broadcast %67 : vector<5x1xf32> to vector<5x5xf32>
    %69 = arith.subf %65, %68 : vector<5x5xf32>
    %70 = math.exp %69 : vector<5x5xf32>
    %cst_33 = arith.constant dense<0.000000e+00> : vector<5xf32>
    %71 = vector.multi_reduction <add>, %70, %cst_33 [1] : vector<5x5xf32> to vector<5xf32>
    %72 = vector.shape_cast %71 : vector<5xf32> to vector<5x1xf32>
    %73 = tpu.reciprocal %72 {approx = true} : vector<5x1xf32> -> vector<5x1xf32>
    %74 = vector.broadcast %73 : vector<5x1xf32> to vector<5x5xf32>
    %75 = arith.mulf %70, %74 : vector<5x5xf32>
    %cst_34 = arith.constant dense<0.000000e+00> : vector<5x16xf32>
    %76 = tpu.matmul %75, %61, %cst_34 {dimension_numbers = #tpu.dot_dimension_numbers<[1], [0], [0], [1], [0, 0, 1, 1], [], []>} : vector<5x5xf32>, vector<5x16xf32>, vector<5x16xf32> -> vector<5x16xf32>
    %77 = tpu.concatenate %58, %76 in 1 : vector<5x16xf32>, vector<5x16xf32> -> vector<5x32xf32>
    %c0_35 = arith.constant 0 : index
    %c0_36 = arith.constant 0 : index
    %c0_37 = arith.constant 0 : index
    %78 = vector.load %arg10[%c0_35, %c0_36, %c0_37] : memref<2x32x32xf32, #tpu.memory_space<vmem>>, vector<1x32x32xf32>
    %79 = vector.shape_cast %78 : vector<1x32x32xf32> to vector<32x32xf32>
    %cst_38 = arith.constant dense<0.000000e+00> : vector<5x32xf32>
    %80 = tpu.matmul %77, %79, %cst_38 {dimension_numbers = #tpu.dot_dimension_numbers<[1], [0], [0], [1], [0, 0, 1, 1], [], []>} : vector<5x32xf32>, vector<32x32xf32>, vector<5x32xf32> -> vector<5x32xf32>
    %c0_39 = arith.constant 0 : index
    %c0_40 = arith.constant 0 : index
    %81 = vector.load %arg11[%c0_39, %c0_40] : memref<2x32xf32, #tpu.memory_space<vmem>>, vector<1x32xf32>
    %82 = vector.broadcast %81 : vector<1x32xf32> to vector<5x32xf32>
    %83 = arith.addf %80, %82 : vector<5x32xf32>
    %84 = arith.addf %10, %83 : vector<5x32xf32>
    %c0_41 = arith.constant 0 : index
    %c0_42 = arith.constant 0 : index
    %85 = vector.load %arg12[%c0_41, %c0_42] : memref<2x32xf32, #tpu.memory_space<vmem>>, vector<1x32xf32>
    %c0_43 = arith.constant 0 : index
    %c0_44 = arith.constant 0 : index
    %86 = vector.load %arg13[%c0_43, %c0_44] : memref<2x32xf32, #tpu.memory_space<vmem>>, vector<1x32xf32>
    %cst_45 = arith.constant dense<0.000000e+00> : vector<5xf32>
    %87 = vector.multi_reduction <add>, %84, %cst_45 [1] : vector<5x32xf32> to vector<5xf32>
    %88 = vector.shape_cast %87 : vector<5xf32> to vector<5x1xf32>
    %cst_46 = arith.constant 3.200000e+01 : f32
    %89 = vector.broadcast %cst_46 : f32 to vector<5x1xf32>
    %90 = arith.divf %88, %89 : vector<5x1xf32>
    %91 = vector.broadcast %90 : vector<5x1xf32> to vector<5x32xf32>
    %92 = arith.subf %84, %91 : vector<5x32xf32>
    %93 = arith.mulf %92, %92 : vector<5x32xf32>
    %cst_47 = arith.constant dense<0.000000e+00> : vector<5xf32>
    %94 = vector.multi_reduction <add>, %93, %cst_47 [1] : vector<5x32xf32> to vector<5xf32>
    %95 = vector.shape_cast %94 : vector<5xf32> to vector<5x1xf32>
    %cst_48 = arith.constant 3.200000e+01 : f32
    %96 = vector.broadcast %cst_48 : f32 to vector<5x1xf32>
    %97 = arith.divf %95, %96 : vector<5x1xf32>
    %98 = vector.broadcast %90 : vector<5x1xf32> to vector<5x32xf32>
    %99 = arith.subf %84, %98 : vector<5x32xf32>
    %cst_49 = arith.constant 9.99999997E-7 : f32
    %100 = vector.broadcast %cst_49 : f32 to vector<5x1xf32>
    %101 = arith.addf %97, %100 : vector<5x1xf32>
    %102 = math.rsqrt %101 : vector<5x1xf32>
    %103 = vector.broadcast %102 : vector<5x1xf32> to vector<5x32xf32>
    %104 = arith.mulf %99, %103 : vector<5x32xf32>
    %105 = vector.broadcast %85 : vector<1x32xf32> to vector<5x32xf32>
    %106 = arith.mulf %104, %105 : vector<5x32xf32>
    %107 = vector.broadcast %86 : vector<1x32xf32> to vector<5x32xf32>
    %108 = arith.addf %106, %107 : vector<5x32xf32>
    %c0_50 = arith.constant 0 : index
    %c0_51 = arith.constant 0 : index
    %c0_52 = arith.constant 0 : index
    %109 = vector.load %arg14[%c0_50, %c0_51, %c0_52] : memref<2x32x128xf32, #tpu.memory_space<vmem>>, vector<1x32x128xf32>
    %110 = vector.shape_cast %109 : vector<1x32x128xf32> to vector<32x128xf32>
    %cst_53 = arith.constant dense<0.000000e+00> : vector<5x128xf32>
    %111 = tpu.matmul %108, %110, %cst_53 {dimension_numbers = #tpu.dot_dimension_numbers<[1], [0], [0], [1], [0, 0, 1, 1], [], []>} : vector<5x32xf32>, vector<32x128xf32>, vector<5x128xf32> -> vector<5x128xf32>
    %c0_54 = arith.constant 0 : index
    %c0_55 = arith.constant 0 : index
    %112 = vector.load %arg15[%c0_54, %c0_55] : memref<2x128xf32, #tpu.memory_space<vmem>>, vector<1x128xf32>
    %113 = vector.broadcast %112 : vector<1x128xf32> to vector<5x128xf32>
    %114 = arith.addf %111, %113 : vector<5x128xf32>
    %115 = arith.mulf %114, %114 : vector<5x128xf32>
    %116 = arith.mulf %114, %115 : vector<5x128xf32>
    %cst_56 = arith.constant 4.471500e-02 : f32
    %117 = vector.broadcast %cst_56 : f32 to vector<5x128xf32>
    %118 = arith.mulf %117, %116 : vector<5x128xf32>
    %119 = arith.addf %114, %118 : vector<5x128xf32>
    %cst_57 = arith.constant 0.797884583 : f32
    %120 = vector.broadcast %cst_57 : f32 to vector<5x128xf32>
    %121 = arith.mulf %120, %119 : vector<5x128xf32>
    %122 = math.tanh %121 : vector<5x128xf32>
    %cst_58 = arith.constant 1.000000e+00 : f32
    %123 = vector.broadcast %cst_58 : f32 to vector<5x128xf32>
    %124 = arith.addf %123, %122 : vector<5x128xf32>
    %cst_59 = arith.constant 5.000000e-01 : f32
    %125 = vector.broadcast %cst_59 : f32 to vector<5x128xf32>
    %126 = arith.mulf %125, %124 : vector<5x128xf32>
    %127 = arith.mulf %114, %126 : vector<5x128xf32>
    %c0_60 = arith.constant 0 : index
    %c0_61 = arith.constant 0 : index
    %c0_62 = arith.constant 0 : index
    %128 = vector.load %arg16[%c0_60, %c0_61, %c0_62] : memref<2x128x32xf32, #tpu.memory_space<vmem>>, vector<1x128x32xf32>
    %129 = vector.shape_cast %128 : vector<1x128x32xf32> to vector<128x32xf32>
    %cst_63 = arith.constant dense<0.000000e+00> : vector<5x32xf32>
    %130 = tpu.matmul %127, %129, %cst_63 {dimension_numbers = #tpu.dot_dimension_numbers<[1], [0], [0], [1], [0, 0, 1, 1], [], []>} : vector<5x128xf32>, vector<128x32xf32>, vector<5x32xf32> -> vector<5x32xf32>
    %c0_64 = arith.constant 0 : index
    %c0_65 = arith.constant 0 : index
    %131 = vector.load %arg17[%c0_64, %c0_65] : memref<2x32xf32, #tpu.memory_space<vmem>>, vector<1x32xf32>
    %132 = vector.broadcast %131 : vector<1x32xf32> to vector<5x32xf32>
    %133 = arith.addf %130, %132 : vector<5x32xf32>
    %134 = arith.addf %84, %133 : vector<5x32xf32>
    %c1 = arith.constant 1 : index
    %c0_66 = arith.constant 0 : index
    %135 = vector.load %arg6[%c1, %c0_66] : memref<2x32xf32, #tpu.memory_space<vmem>>, vector<1x32xf32>
    %c1_67 = arith.constant 1 : index
    %c0_68 = arith.constant 0 : index
    %136 = vector.load %arg7[%c1_67, %c0_68] : memref<2x32xf32, #tpu.memory_space<vmem>>, vector<1x32xf32>
    %cst_69 = arith.constant dense<0.000000e+00> : vector<5xf32>
    %137 = vector.multi_reduction <add>, %134, %cst_69 [1] : vector<5x32xf32> to vector<5xf32>
    %138 = vector.shape_cast %137 : vector<5xf32> to vector<5x1xf32>
    %cst_70 = arith.constant 3.200000e+01 : f32
    %139 = vector.broadcast %cst_70 : f32 to vector<5x1xf32>
    %140 = arith.divf %138, %139 : vector<5x1xf32>
    %141 = vector.broadcast %140 : vector<5x1xf32> to vector<5x32xf32>
    %142 = arith.subf %134, %141 : vector<5x32xf32>
    %143 = arith.mulf %142, %142 : vector<5x32xf32>
    %cst_71 = arith.constant dense<0.000000e+00> : vector<5xf32>
    %144 = vector.multi_reduction <add>, %143, %cst_71 [1] : vector<5x32xf32> to vector<5xf32>
    %145 = vector.shape_cast %144 : vector<5xf32> to vector<5x1xf32>
    %cst_72 = arith.constant 3.200000e+01 : f32
    %146 = vector.broadcast %cst_72 : f32 to vector<5x1xf32>
    %147 = arith.divf %145, %146 : vector<5x1xf32>
    %148 = vector.broadcast %140 : vector<5x1xf32> to vector<5x32xf32>
    %149 = arith.subf %134, %148 : vector<5x32xf32>
    %cst_73 = arith.constant 9.99999997E-7 : f32
    %150 = vector.broadcast %cst_73 : f32 to vector<5x1xf32>
    %151 = arith.addf %147, %150 : vector<5x1xf32>
    %152 = math.rsqrt %151 : vector<5x1xf32>
    %153 = vector.broadcast %152 : vector<5x1xf32> to vector<5x32xf32>
    %154 = arith.mulf %149, %153 : vector<5x32xf32>
    %155 = vector.broadcast %135 : vector<1x32xf32> to vector<5x32xf32>
    %156 = arith.mulf %154, %155 : vector<5x32xf32>
    %157 = vector.broadcast %136 : vector<1x32xf32> to vector<5x32xf32>
    %158 = arith.addf %156, %157 : vector<5x32xf32>
    %c1_74 = arith.constant 1 : index
    %c0_75 = arith.constant 0 : index
    %c0_76 = arith.constant 0 : index
    %159 = vector.load %arg8[%c1_74, %c0_75, %c0_76] : memref<2x32x96xf32, #tpu.memory_space<vmem>>, vector<1x32x96xf32>
    %160 = vector.shape_cast %159 : vector<1x32x96xf32> to vector<32x96xf32>
    %cst_77 = arith.constant dense<0.000000e+00> : vector<5x96xf32>
    %161 = tpu.matmul %158, %160, %cst_77 {dimension_numbers = #tpu.dot_dimension_numbers<[1], [0], [0], [1], [0, 0, 1, 1], [], []>} : vector<5x32xf32>, vector<32x96xf32>, vector<5x96xf32> -> vector<5x96xf32>
    %c1_78 = arith.constant 1 : index
    %c0_79 = arith.constant 0 : index
    %162 = vector.load %arg9[%c1_78, %c0_79] : memref<2x96xf32, #tpu.memory_space<vmem>>, vector<1x96xf32>
    %163 = vector.broadcast %162 : vector<1x96xf32> to vector<5x96xf32>
    %164 = arith.addf %161, %163 : vector<5x96xf32>
    %165 = vector.extract_strided_slice %164 {offsets = [0, 0], sizes = [5, 16], strides = [1, 1]} : vector<5x96xf32> to vector<5x16xf32>
    %166 = vector.extract_strided_slice %164 {offsets = [0, 32], sizes = [5, 16], strides = [1, 1]} : vector<5x96xf32> to vector<5x16xf32>
    %167 = vector.extract_strided_slice %164 {offsets = [0, 64], sizes = [5, 16], strides = [1, 1]} : vector<5x96xf32> to vector<5x16xf32>
    %168 = tpu.transpose %166, [1, 0] : vector<5x16xf32> -> vector<16x5xf32>
    %cst_80 = arith.constant dense<0.000000e+00> : vector<5x5xf32>
    %169 = tpu.matmul %165, %168, %cst_80 {dimension_numbers = #tpu.dot_dimension_numbers<[1], [0], [0], [1], [0, 0, 1, 1], [], []>} : vector<5x16xf32>, vector<16x5xf32>, vector<5x5xf32> -> vector<5x5xf32>
    %cst_81 = arith.constant 2.500000e-01 : f32
    %170 = vector.broadcast %cst_81 : f32 to vector<5x5xf32>
    %171 = arith.mulf %169, %170 : vector<5x5xf32>
    %cst_82 = arith.constant dense<0xFF800000> : vector<5xf32>
    %172 = vector.multi_reduction <maximumf>, %171, %cst_82 [1] : vector<5x5xf32> to vector<5xf32>
    %173 = vector.shape_cast %172 : vector<5xf32> to vector<5x1xf32>
    %174 = vector.broadcast %173 : vector<5x1xf32> to vector<5x5xf32>
    %175 = arith.subf %171, %174 : vector<5x5xf32>
    %176 = math.exp %175 : vector<5x5xf32>
    %cst_83 = arith.constant dense<0.000000e+00> : vector<5xf32>
    %177 = vector.multi_reduction <add>, %176, %cst_83 [1] : vector<5x5xf32> to vector<5xf32>
    %178 = vector.shape_cast %177 : vector<5xf32> to vector<5x1xf32>
    %179 = tpu.reciprocal %178 {approx = true} : vector<5x1xf32> -> vector<5x1xf32>
    %180 = vector.broadcast %179 : vector<5x1xf32> to vector<5x5xf32>
    %181 = arith.mulf %176, %180 : vector<5x5xf32>
    %cst_84 = arith.constant dense<0.000000e+00> : vector<5x16xf32>
    %182 = tpu.matmul %181, %167, %cst_84 {dimension_numbers = #tpu.dot_dimension_numbers<[1], [0], [0], [1], [0, 0, 1, 1], [], []>} : vector<5x5xf32>, vector<5x16xf32>, vector<5x16xf32> -> vector<5x16xf32>
    %183 = vector.extract_strided_slice %164 {offsets = [0, 16], sizes = [5, 16], strides = [1, 1]} : vector<5x96xf32> to vector<5x16xf32>
    %184 = vector.extract_strided_slice %164 {offsets = [0, 48], sizes = [5, 16], strides = [1, 1]} : vector<5x96xf32> to vector<5x16xf32>
    %185 = vector.extract_strided_slice %164 {offsets = [0, 80], sizes = [5, 16], strides = [1, 1]} : vector<5x96xf32> to vector<5x16xf32>
    %186 = tpu.transpose %184, [1, 0] : vector<5x16xf32> -> vector<16x5xf32>
    %cst_85 = arith.constant dense<0.000000e+00> : vector<5x5xf32>
    %187 = tpu.matmul %183, %186, %cst_85 {dimension_numbers = #tpu.dot_dimension_numbers<[1], [0], [0], [1], [0, 0, 1, 1], [], []>} : vector<5x16xf32>, vector<16x5xf32>, vector<5x5xf32> -> vector<5x5xf32>
    %cst_86 = arith.constant 2.500000e-01 : f32
    %188 = vector.broadcast %cst_86 : f32 to vector<5x5xf32>
    %189 = arith.mulf %187, %188 : vector<5x5xf32>
    %cst_87 = arith.constant dense<0xFF800000> : vector<5xf32>
    %190 = vector.multi_reduction <maximumf>, %189, %cst_87 [1] : vector<5x5xf32> to vector<5xf32>
    %191 = vector.shape_cast %190 : vector<5xf32> to vector<5x1xf32>
    %192 = vector.broadcast %191 : vector<5x1xf32> to vector<5x5xf32>
    %193 = arith.subf %189, %192 : vector<5x5xf32>
    %194 = math.exp %193 : vector<5x5xf32>
    %cst_88 = arith.constant dense<0.000000e+00> : vector<5xf32>
    %195 = vector.multi_reduction <add>, %194, %cst_88 [1] : vector<5x5xf32> to vector<5xf32>
    %196 = vector.shape_cast %195 : vector<5xf32> to vector<5x1xf32>
    %197 = tpu.reciprocal %196 {approx = true} : vector<5x1xf32> -> vector<5x1xf32>
    %198 = vector.broadcast %197 : vector<5x1xf32> to vector<5x5xf32>
    %199 = arith.mulf %194, %198 : vector<5x5xf32>
    %cst_89 = arith.constant dense<0.000000e+00> : vector<5x16xf32>
    %200 = tpu.matmul %199, %185, %cst_89 {dimension_numbers = #tpu.dot_dimension_numbers<[1], [0], [0], [1], [0, 0, 1, 1], [], []>} : vector<5x5xf32>, vector<5x16xf32>, vector<5x16xf32> -> vector<5x16xf32>
    %201 = tpu.concatenate %182, %200 in 1 : vector<5x16xf32>, vector<5x16xf32> -> vector<5x32xf32>
    %c1_90 = arith.constant 1 : index
    %c0_91 = arith.constant 0 : index
    %c0_92 = arith.constant 0 : index
    %202 = vector.load %arg10[%c1_90, %c0_91, %c0_92] : memref<2x32x32xf32, #tpu.memory_space<vmem>>, vector<1x32x32xf32>
    %203 = vector.shape_cast %202 : vector<1x32x32xf32> to vector<32x32xf32>
    %cst_93 = arith.constant dense<0.000000e+00> : vector<5x32xf32>
    %204 = tpu.matmul %201, %203, %cst_93 {dimension_numbers = #tpu.dot_dimension_numbers<[1], [0], [0], [1], [0, 0, 1, 1], [], []>} : vector<5x32xf32>, vector<32x32xf32>, vector<5x32xf32> -> vector<5x32xf32>
    %c1_94 = arith.constant 1 : index
    %c0_95 = arith.constant 0 : index
    %205 = vector.load %arg11[%c1_94, %c0_95] : memref<2x32xf32, #tpu.memory_space<vmem>>, vector<1x32xf32>
    %206 = vector.broadcast %205 : vector<1x32xf32> to vector<5x32xf32>
    %207 = arith.addf %204, %206 : vector<5x32xf32>
    %208 = arith.addf %134, %207 : vector<5x32xf32>
    %c1_96 = arith.constant 1 : index
    %c0_97 = arith.constant 0 : index
    %209 = vector.load %arg12[%c1_96, %c0_97] : memref<2x32xf32, #tpu.memory_space<vmem>>, vector<1x32xf32>
    %c1_98 = arith.constant 1 : index
    %c0_99 = arith.constant 0 : index
    %210 = vector.load %arg13[%c1_98, %c0_99] : memref<2x32xf32, #tpu.memory_space<vmem>>, vector<1x32xf32>
    %cst_100 = arith.constant dense<0.000000e+00> : vector<5xf32>
    %211 = vector.multi_reduction <add>, %208, %cst_100 [1] : vector<5x32xf32> to vector<5xf32>
    %212 = vector.shape_cast %211 : vector<5xf32> to vector<5x1xf32>
    %cst_101 = arith.constant 3.200000e+01 : f32
    %213 = vector.broadcast %cst_101 : f32 to vector<5x1xf32>
    %214 = arith.divf %212, %213 : vector<5x1xf32>
    %215 = vector.broadcast %214 : vector<5x1xf32> to vector<5x32xf32>
    %216 = arith.subf %208, %215 : vector<5x32xf32>
    %217 = arith.mulf %216, %216 : vector<5x32xf32>
    %cst_102 = arith.constant dense<0.000000e+00> : vector<5xf32>
    %218 = vector.multi_reduction <add>, %217, %cst_102 [1] : vector<5x32xf32> to vector<5xf32>
    %219 = vector.shape_cast %218 : vector<5xf32> to vector<5x1xf32>
    %cst_103 = arith.constant 3.200000e+01 : f32
    %220 = vector.broadcast %cst_103 : f32 to vector<5x1xf32>
    %221 = arith.divf %219, %220 : vector<5x1xf32>
    %222 = vector.broadcast %214 : vector<5x1xf32> to vector<5x32xf32>
    %223 = arith.subf %208, %222 : vector<5x32xf32>
    %cst_104 = arith.constant 9.99999997E-7 : f32
    %224 = vector.broadcast %cst_104 : f32 to vector<5x1xf32>
    %225 = arith.addf %221, %224 : vector<5x1xf32>
    %226 = math.rsqrt %225 : vector<5x1xf32>
    %227 = vector.broadcast %226 : vector<5x1xf32> to vector<5x32xf32>
    %228 = arith.mulf %223, %227 : vector<5x32xf32>
    %229 = vector.broadcast %209 : vector<1x32xf32> to vector<5x32xf32>
    %230 = arith.mulf %228, %229 : vector<5x32xf32>
    %231 = vector.broadcast %210 : vector<1x32xf32> to vector<5x32xf32>
    %232 = arith.addf %230, %231 : vector<5x32xf32>
    %c1_105 = arith.constant 1 : index
    %c0_106 = arith.constant 0 : index
    %c0_107 = arith.constant 0 : index
    %233 = vector.load %arg14[%c1_105, %c0_106, %c0_107] : memref<2x32x128xf32, #tpu.memory_space<vmem>>, vector<1x32x128xf32>
    %234 = vector.shape_cast %233 : vector<1x32x128xf32> to vector<32x128xf32>
    %cst_108 = arith.constant dense<0.000000e+00> : vector<5x128xf32>
    %235 = tpu.matmul %232, %234, %cst_108 {dimension_numbers = #tpu.dot_dimension_numbers<[1], [0], [0], [1], [0, 0, 1, 1], [], []>} : vector<5x32xf32>, vector<32x128xf32>, vector<5x128xf32> -> vector<5x128xf32>
    %c1_109 = arith.constant 1 : index
    %c0_110 = arith.constant 0 : index
    %236 = vector.load %arg15[%c1_109, %c0_110] : memref<2x128xf32, #tpu.memory_space<vmem>>, vector<1x128xf32>
    %237 = vector.broadcast %236 : vector<1x128xf32> to vector<5x128xf32>
    %238 = arith.addf %235, %237 : vector<5x128xf32>
    %239 = arith.mulf %238, %238 : vector<5x128xf32>
    %240 = arith.mulf %238, %239 : vector<5x128xf32>
    %cst_111 = arith.constant 4.471500e-02 : f32
    %241 = vector.broadcast %cst_111 : f32 to vector<5x128xf32>
    %242 = arith.mulf %241, %240 : vector<5x128xf32>
    %243 = arith.addf %238, %242 : vector<5x128xf32>
    %cst_112 = arith.constant 0.797884583 : f32
    %244 = vector.broadcast %cst_112 : f32 to vector<5x128xf32>
    %245 = arith.mulf %244, %243 : vector<5x128xf32>
    %246 = math.tanh %245 : vector<5x128xf32>
    %cst_113 = arith.constant 1.000000e+00 : f32
    %247 = vector.broadcast %cst_113 : f32 to vector<5x128xf32>
    %248 = arith.addf %247, %246 : vector<5x128xf32>
    %cst_114 = arith.constant 5.000000e-01 : f32
    %249 = vector.broadcast %cst_114 : f32 to vector<5x128xf32>
    %250 = arith.mulf %249, %248 : vector<5x128xf32>
    %251 = arith.mulf %238, %250 : vector<5x128xf32>
    %c1_115 = arith.constant 1 : index
    %c0_116 = arith.constant 0 : index
    %c0_117 = arith.constant 0 : index
    %252 = vector.load %arg16[%c1_115, %c0_116, %c0_117] : memref<2x128x32xf32, #tpu.memory_space<vmem>>, vector<1x128x32xf32>
    %253 = vector.shape_cast %252 : vector<1x128x32xf32> to vector<128x32xf32>
    %cst_118 = arith.constant dense<0.000000e+00> : vector<5x32xf32>
    %254 = tpu.matmul %251, %253, %cst_118 {dimension_numbers = #tpu.dot_dimension_numbers<[1], [0], [0], [1], [0, 0, 1, 1], [], []>} : vector<5x128xf32>, vector<128x32xf32>, vector<5x32xf32> -> vector<5x32xf32>
    %c1_119 = arith.constant 1 : index
    %c0_120 = arith.constant 0 : index
    %255 = vector.load %arg17[%c1_119, %c0_120] : memref<2x32xf32, #tpu.memory_space<vmem>>, vector<1x32xf32>
    %256 = vector.broadcast %255 : vector<1x32xf32> to vector<5x32xf32>
    %257 = arith.addf %254, %256 : vector<5x32xf32>
    %258 = arith.addf %208, %257 : vector<5x32xf32>
    %c0_121 = arith.constant 0 : index
    %c0_122 = arith.constant 0 : index
    %259 = vector.load %arg18[%c0_121, %c0_122] : memref<1x32xf32, #tpu.memory_space<vmem>>, vector<1x32xf32>
    %c0_123 = arith.constant 0 : index
    %c0_124 = arith.constant 0 : index
    %260 = vector.load %arg19[%c0_123, %c0_124] : memref<1x32xf32, #tpu.memory_space<vmem>>, vector<1x32xf32>
    %cst_125 = arith.constant dense<0.000000e+00> : vector<5xf32>
    %261 = vector.multi_reduction <add>, %258, %cst_125 [1] : vector<5x32xf32> to vector<5xf32>
    %262 = vector.shape_cast %261 : vector<5xf32> to vector<5x1xf32>
    %cst_126 = arith.constant 3.200000e+01 : f32
    %263 = vector.broadcast %cst_126 : f32 to vector<5x1xf32>
    %264 = arith.divf %262, %263 : vector<5x1xf32>
    %265 = vector.broadcast %264 : vector<5x1xf32> to vector<5x32xf32>
    %266 = arith.subf %258, %265 : vector<5x32xf32>
    %267 = arith.mulf %266, %266 : vector<5x32xf32>
    %cst_127 = arith.constant dense<0.000000e+00> : vector<5xf32>
    %268 = vector.multi_reduction <add>, %267, %cst_127 [1] : vector<5x32xf32> to vector<5xf32>
    %269 = vector.shape_cast %268 : vector<5xf32> to vector<5x1xf32>
    %cst_128 = arith.constant 3.200000e+01 : f32
    %270 = vector.broadcast %cst_128 : f32 to vector<5x1xf32>
    %271 = arith.divf %269, %270 : vector<5x1xf32>
    %272 = vector.broadcast %264 : vector<5x1xf32> to vector<5x32xf32>
    %273 = arith.subf %258, %272 : vector<5x32xf32>
    %cst_129 = arith.constant 9.99999997E-7 : f32
    %274 = vector.broadcast %cst_129 : f32 to vector<5x1xf32>
    %275 = arith.addf %271, %274 : vector<5x1xf32>
    %276 = math.rsqrt %275 : vector<5x1xf32>
    %277 = vector.broadcast %276 : vector<5x1xf32> to vector<5x32xf32>
    %278 = arith.mulf %273, %277 : vector<5x32xf32>
    %279 = vector.broadcast %259 : vector<1x32xf32> to vector<5x32xf32>
    %280 = arith.mulf %278, %279 : vector<5x32xf32>
    %281 = vector.broadcast %260 : vector<1x32xf32> to vector<5x32xf32>
    %282 = arith.addf %280, %281 : vector<5x32xf32>
    %283 = vector.extract_strided_slice %282 {offsets = [0, 0], sizes = [1, 32], strides = [1, 1]} : vector<5x32xf32> to vector<1x32xf32>
    %284 = vector.extract_strided_slice %282 {offsets = [1, 0], sizes = [4, 32], strides = [1, 1]} : vector<5x32xf32> to vector<4x32xf32>
    %cst_130 = arith.constant dense<0.000000e+00> : vector<32xf32>
    %285 = vector.multi_reduction <add>, %284, %cst_130 [0] : vector<4x32xf32> to vector<32xf32>
    %286 = vector.shape_cast %285 : vector<32xf32> to vector<1x32xf32>
    %cst_131 = arith.constant 4.000000e+00 : f32
    %287 = vector.broadcast %cst_131 : f32 to vector<1x32xf32>
    %288 = arith.divf %286, %287 : vector<1x32xf32>
    %289 = tpu.concatenate %283, %288 in 0 : vector<1x32xf32>, vector<1x32xf32> -> vector<2x32xf32>
    %c0_132 = arith.constant 0 : index
    %c0_133 = arith.constant 0 : index
    %c0_134 = arith.constant 0 : index
    %290 = vector.load %arg20[%c0_132, %c0_133, %c0_134] : memref<1x2x32xf32, #tpu.memory_space<vmem>>, vector<1x2x32xf32>
    %291 = vector.shape_cast %290 : vector<1x2x32xf32> to vector<2x32xf32>
    %292 = vector.shape_cast %289 : vector<2x32xf32> to vector<1x2x32xf32>
    tpu.vector_store %arg20[%c0_132, %c0_133, %c0_134], %292 {strides = array<i32>} : memref<1x2x32xf32, #tpu.memory_space<vmem>>, vector<1x2x32xf32>,
    return
  }
  func.func @transform_0(%arg0: i32) -> (i32, i32, i32) {
    %c0_i32 = arith.constant 0 : i32
    %c0_i32_0 = arith.constant 0 : i32
    %c0_i32_1 = arith.constant 0 : i32
    return %arg0, %c0_i32, %c0_i32_0 : i32, i32, i32
  }
  func.func @transform_1(%arg0: i32) -> (i32, i32) {
    %c0_i32 = arith.constant 0 : i32
    %c0_i32_0 = arith.constant 0 : i32
    %c0_i32_1 = arith.constant 0 : i32
    return %c0_i32, %c0_i32_0 : i32, i32
  }
  func.func @transform_2(%arg0: i32) -> (i32, i32) {
    %c0_i32 = arith.constant 0 : i32
    %c0_i32_0 = arith.constant 0 : i32
    %c0_i32_1 = arith.constant 0 : i32
    return %c0_i32, %c0_i32_0 : i32, i32
  }
  func.func @transform_3(%arg0: i32) -> (i32, i32) {
    %c0_i32 = arith.constant 0 : i32
    %c0_i32_0 = arith.constant 0 : i32
    %c0_i32_1 = arith.constant 0 : i32
    return %c0_i32, %c0_i32_0 : i32, i32
  }
  func.func @transform_4(%arg0: i32) -> (i32, i32) {
    %c0_i32 = arith.constant 0 : i32
    %c0_i32_0 = arith.constant 0 : i32
    %c0_i32_1 = arith.constant 0 : i32
    return %c0_i32, %c0_i32_0 : i32, i32
  }
  func.func @transform_5(%arg0: i32) -> (i32, i32) {
    %c0_i32 = arith.constant 0 : i32
    %c0_i32_0 = arith.constant 0 : i32
    %c0_i32_1 = arith.constant 0 : i32
    return %c0_i32, %c0_i32_0 : i32, i32
  }
  func.func @transform_6(%arg0: i32) -> (i32, i32) {
    %c0_i32 = arith.constant 0 : i32
    %c0_i32_0 = arith.constant 0 : i32
    %c0_i32_1 = arith.constant 0 : i32
    return %c0_i32, %c0_i32_0 : i32, i32
  }
  func.func @transform_7(%arg0: i32) -> (i32, i32, i32) {
    %c0_i32 = arith.constant 0 : i32
    %c0_i32_0 = arith.constant 0 : i32
    %c0_i32_1 = arith.constant 0 : i32
    %c0_i32_2 = arith.constant 0 : i32
    return %c0_i32, %c0_i32_0, %c0_i32_1 : i32, i32, i32
  }
  func.func @transform_8(%arg0: i32) -> (i32, i32) {
    %c0_i32 = arith.constant 0 : i32
    %c0_i32_0 = arith.constant 0 : i32
    %c0_i32_1 = arith.constant 0 : i32
    return %c0_i32, %c0_i32_0 : i32, i32
  }
  func.func @transform_9(%arg0: i32) -> (i32, i32, i32) {
    %c0_i32 = arith.constant 0 : i32
    %c0_i32_0 = arith.constant 0 : i32
    %c0_i32_1 = arith.constant 0 : i32
    %c0_i32_2 = arith.constant 0 : i32
    return %c0_i32, %c0_i32_0, %c0_i32_1 : i32, i32, i32
  }
  func.func @transform_10(%arg0: i32) -> (i32, i32) {
    %c0_i32 = arith.constant 0 : i32
    %c0_i32_0 = arith.constant 0 : i32
    %c0_i32_1 = arith.constant 0 : i32
    return %c0_i32, %c0_i32_0 : i32, i32
  }
  func.func @transform_11(%arg0: i32) -> (i32, i32) {
    %c0_i32 = arith.constant 0 : i32
    %c0_i32_0 = arith.constant 0 : i32
    %c0_i32_1 = arith.constant 0 : i32
    return %c0_i32, %c0_i32_0 : i32, i32
  }
  func.func @transform_12(%arg0: i32) -> (i32, i32) {
    %c0_i32 = arith.constant 0 : i32
    %c0_i32_0 = arith.constant 0 : i32
    %c0_i32_1 = arith.constant 0 : i32
    return %c0_i32, %c0_i32_0 : i32, i32
  }
  func.func @transform_13(%arg0: i32) -> (i32, i32, i32) {
    %c0_i32 = arith.constant 0 : i32
    %c0_i32_0 = arith.constant 0 : i32
    %c0_i32_1 = arith.constant 0 : i32
    %c0_i32_2 = arith.constant 0 : i32
    return %c0_i32, %c0_i32_0, %c0_i32_1 : i32, i32, i32
  }
  func.func @transform_14(%arg0: i32) -> (i32, i32) {
    %c0_i32 = arith.constant 0 : i32
    %c0_i32_0 = arith.constant 0 : i32
    %c0_i32_1 = arith.constant 0 : i32
    return %c0_i32, %c0_i32_0 : i32, i32
  }
  func.func @transform_15(%arg0: i32) -> (i32, i32, i32) {
    %c0_i32 = arith.constant 0 : i32
    %c0_i32_0 = arith.constant 0 : i32
    %c0_i32_1 = arith.constant 0 : i32
    %c0_i32_2 = arith.constant 0 : i32
    return %c0_i32, %c0_i32_0, %c0_i32_1 : i32, i32, i32
  }
  func.func @transform_16(%arg0: i32) -> (i32, i32) {
    %c0_i32 = arith.constant 0 : i32
    %c0_i32_0 = arith.constant 0 : i32
    %c0_i32_1 = arith.constant 0 : i32
    return %c0_i32, %c0_i32_0 : i32, i32
  }
  func.func @transform_17(%arg0: i32) -> (i32, i32) {
    %c0_i32 = arith.constant 0 : i32
    %c0_i32_0 = arith.constant 0 : i32
    %c0_i32_1 = arith.constant 0 : i32
    return %c0_i32, %c0_i32_0 : i32, i32
  }
  func.func @transform_18(%arg0: i32) -> (i32, i32) {
    %c0_i32 = arith.constant 0 : i32
    %c0_i32_0 = arith.constant 0 : i32
    %c0_i32_1 = arith.constant 0 : i32
    return %c0_i32, %c0_i32_0 : i32, i32
  }
  func.func @transform_19(%arg0: i32) -> (i32, i32, i32) {
    %c0_i32 = arith.constant 0 : i32
    %c0_i32_0 = arith.constant 0 : i32
    %c0_i32_1 = arith.constant 0 : i32
    return %arg0, %c0_i32, %c0_i32_0 : i32, i32, i32
  }
}

</mosaic_0001>

<bundles_post_ra>
// kernel: kaiko_forward.1
= control target key start
LH: loop header
LB: loop body
LE: loop exit
PB: predicated region body
PF: predicated region fallthrough
CT: control target
= control target key end

     0   :  { %s3399_s0 = inlined_call_operand.vmem [shape: f32[2,4,192], index: 0, kind: input, shape index: {}]   ;;  %s3400_s1 = inlined_call_operand.vmem [shape: f32[192,32], index: 1, kind: input, shape index: {}]   ;;  %s3401_s2 = inlined_call_operand.vmem [shape: f32[1,32], index: 2, kind: input, shape index: {}]   ;;  %s3402_s3 = inlined_call_operand.vmem [shape: f32[1,32], index: 3, kind: input, shape index: {}]   ;;  %s3403_s4 = inlined_call_operand.vmem [shape: f32[5,32], index: 4, kind: input, shape index: {}]   ;;  %s3404_s5 = inlined_call_operand.vmem [shape: f32[2,32], index: 5, kind: input, shape index: {}]   ;;  %s3405_s6 = inlined_call_operand.vmem [shape: f32[2,32], index: 6, kind: input, shape index: {}]   ;;  %s3406_s7 = inlined_call_operand.vmem [shape: f32[2,32,96], index: 7, kind: input, shape index: {}]   ;;  %s3407_s8 = inlined_call_operand.vmem [shape: f32[2,96], index: 8, kind: input, shape index: {}]   ;;  %s3408_s9 = inlined_call_operand.vmem [shape: f32[2,32,32], index: 9, kind: input, shape index: {}]   ;;  %s3409_s10 = inlined_call_operand.vmem [shape: f32[2,32], index: 10, kind: input, shape index: {}]   ;;  %s3410_s11 = inlined_call_operand.vmem [shape: f32[2,32], index: 11, kind: input, shape index: {}]   ;;  %s3411_s12 = inlined_call_operand.vmem [shape: f32[2,32], index: 12, kind: input, shape index: {}]   ;;  %s3412_s13 = inlined_call_operand.vmem [shape: f32[2,32,128], index: 13, kind: input, shape index: {}]   ;;  %s3413_s14 = inlined_call_operand.vmem [shape: f32[2,128], index: 14, kind: input, shape index: {}]   ;;  %s3414_s15 = inlined_call_operand.vmem [shape: f32[2,128,32], index: 15, kind: input, shape index: {}]   ;;  %s3415_s16 = inlined_call_operand.vmem [shape: f32[2,32], index: 16, kind: input, shape index: {}]   ;;  %s3416_s17 = inlined_call_operand.vmem [shape: f32[1,32], index: 17, kind: input, shape index: {}]   ;;  %s3417_s18 = inlined_call_operand.vmem [shape: f32[1,32], index: 18, kind: input, shape index: {}]   ;;  %s3418_s19 = inlined_call_operand.vmem [shape: f32[2,2,32], index: 19, kind: output, shape index: {}]  }
   0x1   :  { %3424 = sst [smem:[#allocation2_spill]] %s3399_s0  ;;  %s2919_s0 = smov 0  }
   0x2   :  { %3425 = sst [smem:[#allocation3_spill]] %s3400_s1 }
   0x3   :  { %3426 = sst [smem:[#allocation4_spill]] %s3401_s2 }
   0x4   :  { %3427 = sst [smem:[#allocation5_spill]] %s3402_s3 }
   0x5 LB: > { %s2297_s30 = sadd.s32 4294967295, %s2808_s0   ;;  %p2301_p0 = scmp.ge.s32.totalorder %s2808_s0, 1  ;;  %s2808_s0 = sphi %s2919_s0, %s29_s0  }
   0x6   : > { %p537_p1 = scmp.lt.s32.totalorder %s2808_s0, 3 }
   0x8   : > { %p538_p2 = pnand %p2301_p0, %p537_p1 }
   0x9   : > { %s3428_s1 = sld [smem:[#allocation3_spill]] (!%p538_p2)  ;;  %p592_p3 = scmp.lt.s32.totalorder (!%p538_p2), %s2297_s30, 1  ;;  %v2810_v3 = vmov (!%p538_p2), 0.0|0.0   ;;  %vm635_vm0 = vcmask (!%p538_p2), 523264   ;;  %vm712_vm1 = vcmask (!%p538_p2), 1040384   ;;  %vm718_vm2 = vcmask (!%p538_p2), 258048  }
   0xa   : > { %541 = sbr.rel (%p538_p2) target bundleno = 6654 (0x19fe), region = 96  ;;  %2634 = vmatprep.subr.bf16.mxu0 (!%p538_p2), %v2810_v3  ;;  %2670 = vmatprep.subr.bf16.mxu1 (!%p538_p2), %v2810_v3  ;;  %s3429_s2 = sld [smem:[#allocation2_spill]] (!%p538_p2)  ;;  %v714_v45 = vld [vmem:[%s3403_s4] sm:$0x1f] (!%p538_p2)  ;;  %v744_v55 = vld [vmem:[%s3406_s7 + $0x8] sm:$0xff] (!%p538_p2)  ;;  %v745_v56 = vld [vmem:[%s3406_s7 + $0x10] sm:$0xff] (!%p538_p2) }
   0xb   : > { %s3430_s3 = sld [smem:[#allocation4_spill]] (!%p538_p2)  ;;  %s3431_s28 = sld [smem:[#allocation5_spill]] (!%p538_p2)  ;;  %v743_v54 = vld [vmem:[%s3406_s7] sm:$0xff] (!%p538_p2)  ;;  %v746_v58 = vld [vmem:[%s3406_s7 + $0x18] sm:$0xff] (!%p538_p2)  ;;  %vm2811_vm3 = vmmov (!%p538_p2), 0   ;;  %v2812_v59 = vmov (!%p538_p2), 0.0  }
   0xc   : > { %v2671_v57 = vpack.c.bf16 (!%p538_p2), %v744_v55, %v743_v54  ;;  %2466 = vmatprep.mubr.msk.f32.mxu1 (!%p538_p2), %vm2811_vm3, %v2812_v59  ;;  %v2674_v60 = vpack.c.bf16 (!%p538_p2), %v746_v58, %v745_v56  ;;  %vm752_vm4 = vcmask (!%p538_p2), 261120   ;;  %s3422_s24 = smov (!%p538_p2), 80   ;;  %vm829_vm5 = vcmask (!%p538_p2), 130048   ;;  %s3423_s25 = smov (!%p538_p2), 112  }
   0xd   : > { %vm923_vm6 = vcmask (!%p538_p2), 1044480   ;;  %vm905_vm7 = vcmask (!%p538_p2), 36864   ;;  %vm919_vm8 = vcmask (!%p538_p2), 39936   ;;  %s3421_s26 = smov (!%p538_p2), 16   ;;  %vm2231_vm9 = vcmask (!%p538_p2), 257024  }
   0xe   : > { %2672 = vmatpush3.bf16.msra.mxu1 (!%p538_p2), %v2671_v57  ;;  %vm2242_vm10 = vcmask (!%p538_p2), 254976  }
   0xf   : > { %v602_v0 = vld [vmem:[%s3428_s1] sm:$0xff] (!%p538_p2)  ;;  %v603_v1 = vld [vmem:[%s3428_s1 + $0x8] sm:$0xff] (!%p538_p2)  ;;  %v604_v2 = vld [vmem:[%s3428_s1 + $0x10] sm:$0xff] (!%p538_p2)  ;;  %2673 = vmatprep.subr.bf16.mxu1 (!%p538_p2), %v2810_v3 }
  0x10   : > { %v2635_v4 = vpack.c.bf16 (!%p538_p2), %v603_v1, %v602_v0  ;;  %v605_v5 = vld [vmem:[%s3428_s1 + $0x18] sm:$0xff] (!%p538_p2)  ;;  %v606_v7 = vld [vmem:[%s3428_s1 + $0x20] sm:$0xff] (!%p538_p2)  ;;  %v607_v8 = vld [vmem:[%s3428_s1 + $0x28] sm:$0xff] (!%p538_p2) }
  0x11   : > { %s3437_s30 = smov (!%p592_p3, %s2297_s30), 1  ;;  %v2638_v6 = vpack.c.bf16 %v605_v5, %v604_v2  ;;  %v2641_v9 = vpack.c.bf16 %v607_v8, %v606_v7  ;;  %v608_v10 = vld [vmem:[%s3428_s1 + $0x30] sm:$0xff]  ;;  %v609_v11 = vld [vmem:[%s3428_s1 + $0x38] sm:$0xff]  ;;  %v610_v15 = vld [vmem:[%s3428_s1 + $0x40] sm:$0xff] }
  0x12   : > { %2636 = vmatpush1.bf16.msra.mxu0 %v2635_v4  ;;  %s2377_s20 = sshll.u32 %s3437_s30, 3  ;;  %v2644_v14 = vpack.c.bf16 %v609_v11, %v608_v10  ;;  %v611_v16 = vld [vmem:[%s3428_s1 + $0x48] sm:$0xff]  ;;  %v612_v18 = vld [vmem:[%s3428_s1 + $0x50] sm:$0xff]  ;;  %v613_v19 = vld [vmem:[%s3428_s1 + $0x58] sm:$0xff]  ;;  %2675 = vmatpush3.bf16.msra.mxu1 %v2674_v60 }
  0x13   : > { %2637 = vmatprep.subr.bf16.mxu0 %v2810_v3  ;;  %s596_s23 = scalar_lea.vmem %s3429_s2, %s2377_s20  ;;  %v2647_v17 = vpack.c.bf16 %v611_v16, %v610_v15  ;;  %v2650_v20 = vpack.c.bf16 %v613_v19, %v612_v18  ;;  %v614_v21 = vld [vmem:[%s3428_s1 + $0x60] sm:$0xff]  ;;  %v615_v22 = vld [vmem:[%s3428_s1 + $0x68] sm:$0xff]  ;;  %v616_v24 = vld [vmem:[%s3428_s1 + $0x70] sm:$0xff]  ;;  %2469 = vmatprep.subr.mxu1 %v2812_v59  ;;  %s2813_s2 = smov 64  }
  0x14   : > { %v601_v12 = vld [vmem:[%s596_s23] sm:$0xff]  ;;  %v2653_v23 = vpack.c.bf16 %v615_v22, %v614_v21  ;;  %v617_v25 = vld [vmem:[%s3428_s1 + $0x78] sm:$0xff]  ;;  %v619_v28 = vld [vmem:[%s3428_s1 + $0x88] sm:$0xff]  ;;  %s2814_s23 = smov 96   ;;  %s2304_s20 = sshll.u32 %s3437_s30, 1 }
  0x15   : > { %v634_v13 = vcombine.high %v601_v12, %v601_v12  ;;  %v2656_v26 = vpack.c.bf16 %v617_v25, %v616_v24  ;;  %v618_v27 = vld [vmem:[%s3428_s1 + $0x80] sm:$0xff]  ;;  %v620_v30 = vld [vmem:[%s3428_s1 + $0x90] sm:$0xff]  ;;  %v621_v31 = vld [vmem:[%s3428_s1 + $0x98] sm:$0xff]  ;;  %s600_s22 = scalar_lea.vmem %s3418_s19, %s2304_s20 }
  0x16   : > { %2639 = vmatpush1.bf16.msra.mxu0 %v2638_v6  ;;  %v2659_v29 = vpack.c.bf16 %v619_v28, %v618_v27  ;;  %v2662_v32 = vpack.c.bf16 %v621_v31, %v620_v30  ;;  %v622_v33 = vld [vmem:[%s3428_s1 + $0xa0] sm:$0xff]  ;;  %v623_v34 = vld [vmem:[%s3428_s1 + $0xa8] sm:$0xff]  ;;  %v624_v36 = vld [vmem:[%s3428_s1 + $0xb0] sm:$0xff] }
  0x17   : > { %2640 = vmatprep.subr.bf16.mxu0 %v2810_v3  ;;  %2306 = vmatprep.mubr.msk.f32.mxu0 %vm635_vm0, %v634_v13  ;;  %v2665_v35 = vpack.c.bf16 %v623_v34, %v622_v33  ;;  %v625_v37 = vld [vmem:[%s3428_s1 + $0xb8] sm:$0xff]  ;;  %v2305_v39 = vld [vmem:[%s3430_s3] ss:$0 sm:$0xff]  ;;  %s3420_s3 = smov 48  }
  0x18   : > { %v2668_v38 = vpack.c.bf16 %v625_v37, %v624_v36  ;;  %v708_v43 = vld [vmem:[%s3431_s28] sm:$0x1] }
  0x19   : > { %v2307_v1 = vld [vmem:[%s3404_s5] ss:$0 sm:$0xff] }
  0x1a   : > { %2642 = vmatpush1.bf16.msra.mxu0 %v2641_v9  ;;  %v2308_v4 = vld [vmem:[%s3405_s6] ss:$0 sm:$0xff] }
  0x1b   : > { %2643 = vmatprep.subr.bf16.mxu0 %v2810_v3  ;;  %v2309_v7 = vld [vmem:[%s3407_s8] ss:$0 sm:$0xff] }
  0x1e   : > { %2645 = vmatpush1.bf16.msra.mxu0 %v2644_v14 }
  0x1f   : > { %2646 = vmatprep.subr.bf16.mxu0 %v2810_v3 }
  0x22   : > { %2648 = vmatpush1.bf16.msra.mxu0 %v2647_v17 }
  0x23   : > { %2649 = vmatprep.subr.bf16.mxu0 %v2810_v3 }
  0x26   : > { %2651 = vmatpush1.bf16.msra.mxu0 %v2650_v20 }
  0x27   : > { %2652 = vmatprep.subr.bf16.mxu0 %v2810_v3 }
  0x2a   : > { %2654 = vmatpush1.bf16.msra.mxu0 %v2653_v23 }
  0x2b   : > { %2655 = vmatprep.subr.bf16.mxu0 %v2810_v3 }
  0x2e   : > { %2657 = vmatpush1.bf16.msra.mxu0 %v2656_v26 }
  0x2f   : > { %2658 = vmatprep.subr.bf16.mxu0 %v2810_v3 }
  0x32   : > { %2660 = vmatpush1.bf16.msra.mxu0 %v2659_v29 }
  0x33   : > { %2661 = vmatprep.subr.bf16.mxu0 %v2810_v3 }
  0x36   : > { %2663 = vmatpush1.bf16.msra.mxu0 %v2662_v32 }
  0x37   : > { %2664 = vmatprep.subr.bf16.mxu0 %v2810_v3 }
  0x3a   : > { %2666 = vmatpush1.bf16.msra.mxu0 %v2665_v35 }
  0x3b   : > { %2667 = vmatprep.subr.bf16.mxu0 %v2810_v3 }
  0x3e   : > { %2669 = vmatpush1.bf16.msra.mxu0 %v2668_v38 }
  0x3f   : > { %2557 = vmatprep.subr.mxu0 %v2812_v59 }
  0x41   : > { %703 = vmatmul.mubr.f32.vlgmr.msra.gmra.mrb[0].mxu0 %v601_v12 }
  0x42   : > { %2559 = vmatprep.mubr.msk.f32.mxu0 %vm2811_vm3, %v2812_v59 }
 0x114   : > { %v704_v40 = vpop.f32.mrb[0].mxu0 }
 0x115   : > { %v705_v41 = vadd.f32 %v2305_v39, %v704_v40  ;;  %v706_v42 = vpop.f32.mrb[1].mxu0 }
 0x116   : > { %v1168_v42 = vld [vmem:[%s3408_s9] sm:$0xff] }
 0x117   : > { %v710_v44 = vrot.slane %v705_v41, 7 }
 0x119   : > { %v713_v46 = vsel %vm712_vm1, %v708_v43, %v710_v44  ;;  %v1169_v43 = vld [vmem:[%s3408_s9 + $0x8] sm:$0xff]  ;;  %v1170_v44 = vld [vmem:[%s3408_s9 + $0x10] sm:$0xff] }
 0x11a   : > { %v3028_v47 = vadd.f32 %v714_v45, %v713_v46  ;;  %v2677_v45 = vpack.c.bf16 %v1169_v43, %v1168_v42  ;;  %v1171_v46 = vld [vmem:[%s3408_s9 + $0x18] sm:$0xff] }
 0x11c   : > { %v719_v48 = vsel %vm718_vm2, %v3028_v47, 0.0 }
 0x11d   : > { %720 = vadd.xlane.f32.xlu0 %v719_v48  ;;  %v2680_v48 = vpack.c.bf16 %v1171_v46, %v1170_v44 }
 0x1aa   : > { %v721_v49 = vpop.xlane.xlu0 %720 }
 0x1ab   : > { %v723_v50 = vmul.f32 0.03125, %v721_v49 }
 0x1ad   : > { %v724_v51 = vsub.f32 %v3028_v47, %v723_v50 }
 0x1af   : > { %v725_v52 = vmul.f32 %v724_v51, %v724_v51 }
 0x1b1   : > { %v726_v53 = vsel %vm718_vm2, %v725_v52, 0.0 }
 0x1b2   : > { %727 = vadd.xlane.f32.xlu0 %v726_v53  ;;  %v2319_v53 = vld [vmem:[%s3409_s10] ss:$0 sm:$0xff] }
 0x23f   : > { %v728_v61 = vpop.xlane.xlu0 %727 }
 0x240   : > { %v729_v62 = vmul.f32 0.03125, %v728_v61 }
 0x242   : > { %v730_v63 = vadd.f32 1e-06, %v729_v62 }
 0x244   : > { %2772 = vrsqrt.f32 %v730_v63 }
 0x24e   : > { %v2773_v0 = vpop.eup %2772 }
 0x24f   : > { %v732_v2 = vmul.f32 %v2773_v0, %v724_v51 }
 0x251   : > { %v737_v5 = vmul.f32 %v2307_v1, %v732_v2  ;;  %v1276_v1 = vld [vmem:[%s3412_s13] sm:$0xff] }
 0x253   : > { %v742_v6 = vadd.f32 %v2308_v4, %v737_v5  ;;  %v1278_v4 = vld [vmem:[%s3412_s13 + $0x10] sm:$0xff]  ;;  %v1279_v5 = vld [vmem:[%s3412_s13 + $0x18] sm:$0xff] }
 0x255   : > { %2467 = vmatmul.mubr.msk.f32.vlgmr.msra.gmra.mrb[0].mxu1 %vm752_vm4, %v742_v6  ;;  %v2686_v6 = vpack.c.bf16 %v1279_v5, %v1278_v4  ;;  %v2330_v5 = vld [vmem:[%s3406_s7 + $0x30] sm:$0xff] }
 0x256   : > { %2471 = vmatprep.mubr.msk.f32.mxu1 %vm2811_vm3, %v2812_v59 }
 0x328   : > { %v822_v8 = vpop.f32.mrb[0].mxu1 }
 0x329   : > { %v823_v9 = vadd.f32 %v2309_v7, %v822_v8  ;;  %v2468_v10 = vpop.f32.mrb[1].mxu1 }
 0x32b   : > { %917 = vrot.lane.b32.xlu0 %v823_v9, %s2813_s2  ;;  %827 = vrot.lane.b32.xlu1 %v823_v9, %s2814_s23 }
 0x32f   : > { %998 = vrot.lane.b32.xlu0 %v823_v9, %s3422_s24 }
 0x39d   : > { %v828_v11 = vpop.permute.xlu1 %827  ;;  %v918_v12 = vpop.permute.xlu0 %917 }
 0x39e   : > { %2470 = vmatpush3.xpose.msk.msra.mxu1 %vm829_vm5, %v828_v11  ;;  %v2321_v11 = vld [vmem:[%s3410_s11] ss:$0 sm:$0xff] }
 0x39f   : > { %2474 = vmatprep.subr.mxu1 %v2812_v59 }
 0x3a1   : > { %2472 = vmatmul.mubr.msk.f32.vlgmr.msra.gmra.mrb[2].mxu1 %vm829_vm5, %v823_v9  ;;  %v999_v22 = vpop.permute.xlu0 %998 }
 0x3a2   : > { %2475 = vmatpush3.msk.msra.mxu1 %vm923_vm6, %v918_v12  ;;  %2476 = vmatprep.mubr.msk.f32.mxu1 %vm2811_vm3, %v2812_v59 }
 0x3a3   : > { %2479 = vmatprep.subr.mxu1 %v2812_v59 }
 0x474   : > { %v900_v13 = vpop.f32.mrb[2].mxu1 }
 0x475   : > { %v904_v14 = vmul.f32 0.25, %v900_v13  ;;  %v2473_v15 = vpop.f32.mrb[3].mxu1  ;;  %v1367_v13 = vld [vmem:[%s3414_s15] sm:$0xff] }
 0x476   : > { %v2322_v15 = vld [vmem:[%s3411_s12] ss:$0 sm:$0xff] }
 0x477   : > { %v906_v16 = vsel %vm905_vm7, %v904_v14, -inf }
 0x478   : > { %907 = vmax.xlane.f32.xlu1 %v906_v16 }
 0x505   : > { %v908_v17 = vpop.xlane.xlu1 %907 }
 0x506   : > { %v909_v18 = vsub.f32 %v904_v14, %v908_v17  ;;  %v1368_v14 = vld [vmem:[%s3414_s15 + $0x8] sm:$0xff] }
 0x507   : > { %v2689_v17 = vpack.c.bf16 %v1368_v14, %v1367_v13  ;;  %v2327_v14 = vld [vmem:[%s3405_s6 + $0x1] ss:$0 sm:$0xff] }
 0x508   : > { %v910_v19 = vmul.f32 1.442695, %v909_v18 }
 0x50a   : > { %2774 = vpow2.f32 %v910_v19  ;;  %v1369_v19 = vld [vmem:[%s3414_s15 + $0x10] sm:$0xff] }
 0x514   : > { %v2775_v20 = vpop.eup %2774 }
 0x515   : > { %v912_v21 = vsel %vm905_vm7, %v2775_v20, 0.0 }
 0x516   : > { %913 = vadd.xlane.f32.xlu0 %v912_v21 }
 0x52c   : > { %996 = vrot.lane.b32.xlu0 %v823_v9, %s3423_s25  ;;  %s3435_s25 = smov 16  }
 0x5a3   : > { %v914_v23 = vpop.xlane.xlu0 %913 }
 0x5a4   : > { %2776 = vrcp.f32 %v914_v23  ;;  %v1372_v23 = vld [vmem:[%s3414_s15 + $0x28] sm:$0xff] }
 0x5a7   : > { %v997_v26 = vpop.permute.xlu0 %996 }
 0x5ae   : > { %v2777_v24 = vpop.eup %2776 }
 0x5af   : > { %v916_v25 = vmul.f32 %v2777_v24, %v2775_v20  ;;  %v1370_v20 = vld [vmem:[%s3414_s15 + $0x18] sm:$0xff] }
 0x5b0   : > { %v2692_v21 = vpack.c.bf16 %v1370_v20, %v1369_v19 }
 0x5b1   : > { %2477 = vmatmul.mubr.msk.f32.vlgmr.msra.gmra.mrb[4].mxu1 %vm919_vm8, %v916_v25  ;;  %v1373_v25 = vld [vmem:[%s3414_s15 + $0x30] sm:$0xff] }
 0x5b2   : > { %2480 = vmatpush3.xpose.msk.msra.mxu1 %vm829_vm5, %v999_v22  ;;  %2481 = vmatprep.mubr.msk.f32.mxu1 %vm2811_vm3, %v2812_v59  ;;  %v1371_v22 = vld [vmem:[%s3414_s15 + $0x20] sm:$0xff] }
 0x5b3   : > { %2484 = vmatprep.subr.mxu1 %v2812_v59  ;;  %v2695_v24 = vpack.c.bf16 %v1372_v23, %v1371_v22 }
 0x5b5   : > { %2482 = vmatmul.mubr.msk.f32.vlgmr.msra.gmra.mrb[6].mxu1 %vm829_vm5, %v997_v26  ;;  %v1374_v26 = vld [vmem:[%s3414_s15 + $0x38] sm:$0xff] }
 0x5b6   : > { %2486 = vmatprep.mubr.msk.f32.mxu1 %vm2811_vm3, %v2812_v59 }
 0x684   : > { %v992_v27 = vpop.f32.mrb[4].mxu1 }
 0x685   : > { %v2478_v28 = vpop.f32.mrb[5].mxu1 }
 0x686   : > { %v1375_v28 = vld [vmem:[%s3414_s15 + $0x40] sm:$0xff] }
 0x688   : > { %v1070_v29 = vpop.f32.mrb[6].mxu1 }
 0x689   : > { %v1074_v30 = vmul.f32 0.25, %v1070_v29  ;;  %v2483_v31 = vpop.f32.mrb[7].mxu1  ;;  %v1376_v29 = vld [vmem:[%s3414_s15 + $0x48] sm:$0xff] }
 0x68a   : > { %v2701_v31 = vpack.c.bf16 %v1376_v29, %v1375_v28 }
 0x68b   : > { %v1075_v32 = vsel %vm905_vm7, %v1074_v30, -inf }
 0x68c   : > { %1076 = vmax.xlane.f32.xlu1 %v1075_v32  ;;  %v1378_v32 = vld [vmem:[%s3414_s15 + $0x58] sm:$0xff] }
 0x69d   : > { %1086 = vrot.lane.b32.xlu1 %v823_v9, %s3420_s3  ;;  %s3432_s3 = smov 112  }
 0x719   : > { %v1077_v33 = vpop.xlane.xlu1 %1076 }
 0x71a   : > { %v1078_v34 = vsub.f32 %v1074_v30, %v1077_v33  ;;  %v1377_v30 = vld [vmem:[%s3414_s15 + $0x50] sm:$0xff] }
 0x71b   : > { %v2704_v33 = vpack.c.bf16 %v1378_v32, %v1377_v30 }
 0x71c   : > { %v1079_v35 = vmul.f32 1.442695, %v1078_v34  ;;  %v1379_v34 = vld [vmem:[%s3414_s15 + $0x60] sm:$0xff] }
 0x71d   : > { %v1087_v36 = vpop.permute.xlu1 %1086 }
 0x71e   : > { %2778 = vpow2.f32 %v1079_v35  ;;  %2485 = vmatpush3.msk.msra.mxu1 %vm923_vm6, %v1087_v36  ;;  %v1380_v35 = vld [vmem:[%s3414_s15 + $0x68] sm:$0xff] }
 0x71f   : > { %2676 = vmatprep.subr.bf16.mxu1 %v2810_v3  ;;  %v2707_v36 = vpack.c.bf16 %v1380_v35, %v1379_v34 }
 0x728   : > { %v2779_v37 = vpop.eup %2778 }
 0x729   : > { %v1081_v38 = vsel %vm905_vm7, %v2779_v37, 0.0 }
 0x72a   : > { %1082 = vadd.xlane.f32.xlu0 %v1081_v38  ;;  %v1382_v38 = vld [vmem:[%s3414_s15 + $0x78] sm:$0xff] }
 0x7b7   : > { %v1083_v39 = vpop.xlane.xlu0 %1082 }
 0x7b8   : > { %2780 = vrcp.f32 %v1083_v39 }
 0x7c2   : > { %v2781_v40 = vpop.eup %2780 }
 0x7c3   : > { %v1085_v41 = vmul.f32 %v2781_v40, %v2779_v37  ;;  %v1381_v37 = vld [vmem:[%s3414_s15 + $0x70] sm:$0xff]  ;;  %v2323_v40 = vld [vmem:[%s3413_s14] ss:$0 sm:$0xff] }
 0x7c4   : > { %v2710_v39 = vpack.c.bf16 %v1382_v38, %v1381_v37 }
 0x7c5   : > { %2487 = vmatmul.mubr.msk.f32.vlgmr.msra.gmra.mrb[8].mxu1 %vm919_vm8, %v1085_v41 }
 0x7c6   : > { %2497 = vmatprep.mubr.msk.f32.mxu1 %vm2811_vm3, %v2812_v59  ;;  %2678 = vmatpush3.bf16.msra.mxu1 %v2677_v45 }
 0x7c7   : > { %2679 = vmatprep.subr.bf16.mxu1 %v2810_v3 }
 0x7ca   : > { %2681 = vmatpush3.bf16.msra.mxu1 %v2680_v48 }
 0x7cb   : > { %2682 = vmatprep.subr.bf16.mxu1 %v2810_v3 }
 0x898   : > { %v1159_v49 = vpop.f32.mrb[8].mxu1 }
 0x899   : > { %1164 = vrot.lane.b32.xlu1 %v1159_v49, %s3421_s26  ;;  %v2488_v50 = vpop.f32.mrb[9].mxu1 }
 0x90b   : > { %v1165_v51 = vpop.permute.xlu1 %1164 }
 0x90c   : > { %v1167_v52 = vsel %vm829_vm5, %v992_v27, %v1165_v51  ;;  %v2698_v27 = vpack.c.bf16 %v1374_v26, %v1373_v25 }
 0x90d   : > { %2498 = vmatmul.mubr.msk.f32.vlgmr.msra.gmra.mrb[10].mxu1 %vm752_vm4, %v1167_v52 }
 0x90e   : > { %2508 = vmatprep.mubr.msk.f32.mxu1 %vm2811_vm3, %v2812_v59 }
 0x9e0   : > { %v1246_v54 = vpop.f32.mrb[10].mxu1 }
 0x9e1   : > { %v1247_v55 = vadd.f32 %v2319_v53, %v1246_v54  ;;  %v2499_v56 = vpop.f32.mrb[11].mxu1  ;;  %v2325_v54 = vld [vmem:[%s3415_s16] ss:$0 sm:$0xff] }
 0x9e3   : > { %v3117_v57 = vadd.f32 %v1247_v55, %v3028_v47  ;;  %v1277_v47 = vld [vmem:[%s3412_s13 + $0x8] sm:$0xff] }
 0x9e4   : > { %v2683_v2 = vpack.c.bf16 %v1277_v47, %v1276_v1 }
 0x9e5   : > { %v1253_v58 = vsel %vm718_vm2, %v3117_v57, 0.0 }
 0x9e6   : > { %1254 = vadd.xlane.f32.xlu1 %v1253_v58  ;;  %2684 = vmatpush3.bf16.msra.mxu1 %v2683_v2  ;;  %v2328_v2 = vld [vmem:[%s3406_s7 + $0x20] sm:$0xff] }
 0x9e7   : > { %2685 = vmatprep.subr.bf16.mxu1 %v2810_v3 }
 0x9ea   : > { %2687 = vmatpush3.bf16.msra.mxu1 %v2686_v6  ;;  %v2331_v6 = vld [vmem:[%s3406_s7 + $0x38] sm:$0xff] }
 0x9eb   : > { %2688 = vmatprep.subr.bf16.mxu1 %v2810_v3 }
 0xa73   : > { %v1255_v60 = vpop.xlane.xlu1 %1254 }
 0xa74   : > { %v1256_v61 = vmul.f32 0.03125, %v1255_v60 }
 0xa76   : > { %v1257_v62 = vsub.f32 %v3117_v57, %v1256_v61 }
 0xa78   : > { %v1258_v63 = vmul.f32 %v1257_v62, %v1257_v62 }
 0xa7a   : > { %v1259_v0 = vsel %vm718_vm2, %v1258_v63, 0.0 }
 0xa7b   : > { %1260 = vadd.xlane.f32.xlu0 %v1259_v0 }
 0xb08   : > { %v1261_v7 = vpop.xlane.xlu0 %1260 }
 0xb09   : > { %v1262_v8 = vmul.f32 0.03125, %v1261_v7  ;;  %v2716_v7 = vpack.c.bf16 %v2331_v6, %v2330_v5 }
 0xb0b   : > { %v1263_v9 = vadd.f32 1e-06, %v1262_v8 }
 0xb0d   : > { %2782 = vrsqrt.f32 %v1263_v9 }
 0xb17   : > { %v2783_v10 = vpop.eup %2782 }
 0xb18   : > { %v1265_v12 = vmul.f32 %v2783_v10, %v1257_v62 }
 0xb1a   : > { %v1270_v16 = vmul.f32 %v2321_v11, %v1265_v12  ;;  %v2326_v12 = vld [vmem:[%s3404_s5 + $0x1] ss:$0 sm:$0xff] }
 0xb1c   : > { %v1275_v18 = vadd.f32 %v2322_v15, %v1270_v16 }
 0xb1e   : > { %2509 = vmatmul.mubr.msk.f32.vlgmr.msra.gmra.mrb[12].mxu1 %vm752_vm4, %v1275_v18 }
 0xb1f   : > { %2690 = vmatpush3.bf16.msra.mxu1 %v2689_v17  ;;  %2543 = vmatprep.mubr.msk.f32.mxu1 %vm2811_vm3, %v2812_v59  ;;  %v2332_v17 = vld [vmem:[%s3407_s8 + $0x1] ss:$0 sm:$0xff] }
 0xb20   : > { %2691 = vmatprep.subr.bf16.mxu1 %v2810_v3 }
 0xb23   : > { %2693 = vmatpush3.bf16.msra.mxu1 %v2692_v21 }
 0xb24   : > { %2694 = vmatprep.subr.bf16.mxu1 %v2810_v3 }
 0xb27   : > { %2696 = vmatpush3.bf16.msra.mxu1 %v2695_v24 }
 0xb28   : > { %2697 = vmatprep.subr.bf16.mxu1 %v2810_v3 }
 0xb2b   : > { %2699 = vmatpush3.bf16.msra.mxu1 %v2698_v27 }
 0xb2c   : > { %2700 = vmatprep.subr.bf16.mxu1 %v2810_v3 }
 0xb2f   : > { %2702 = vmatpush3.bf16.msra.mxu1 %v2701_v31 }
 0xb30   : > { %2703 = vmatprep.subr.bf16.mxu1 %v2810_v3 }
 0xb33   : > { %2705 = vmatpush3.bf16.msra.mxu1 %v2704_v33 }
 0xb34   : > { %2706 = vmatprep.subr.bf16.mxu1 %v2810_v3 }
 0xb37   : > { %2708 = vmatpush3.bf16.msra.mxu1 %v2707_v36 }
 0xb38   : > { %2709 = vmatprep.subr.bf16.mxu1 %v2810_v3 }
 0xb3b   : > { %2711 = vmatpush3.bf16.msra.mxu1 %v2710_v39 }
 0xb3c   : > { %2712 = vmatprep.subr.bf16.mxu1 %v2810_v3 }
 0xbf1   : > { %v1354_v41 = vpop.f32.mrb[12].mxu1 }
 0xbf2   : > { %v1355_v42 = vadd.f32 %v2323_v40, %v1354_v41  ;;  %v2510_v43 = vpop.f32.mrb[13].mxu1 }
 0xbf4   : > { %v1358_v44 = vmul.f32 %v1355_v42, %v1355_v42 }
 0xbf6   : > { %v1359_v45 = vmul.f32 %v1358_v44, %v1355_v42 }
 0xbf8   : > { %v1360_v46 = vmul.f32 0.044715, %v1359_v45 }
 0xbfa   : > { %v1361_v48 = vadd.f32 %v1360_v46, %v1355_v42 }
 0xbfc   : > { %v1362_v49 = vmul.f32 0.7978846, %v1361_v48 }
 0xbfe   : > { %2784 = vtanh.f32 %v1362_v49 }
 0xc08   : > { %v2785_v50 = vpop.eup %2784 }
 0xc09   : > { %v1364_v51 = vadd.f32 1.0, %v2785_v50 }
 0xc0b   : > { %v1365_v52 = vmul.f32 0.5, %v1364_v51 }
 0xc0d   : > { %v1366_v53 = vmul.f32 %v1365_v52, %v1355_v42 }
 0xc0f   : > { %2544 = vmatmul.mubr.f32.vlgmr.msra.gmra.mrb[14].mxu1 %v1366_v53  ;;  %v2342_v53 = vld [vmem:[%s3408_s9 + $0x20] sm:$0xff] }
 0xc10   : > { %2554 = vmatprep.mubr.msk.f32.mxu1 %vm2811_vm3, %v2812_v59 }
 0xce2   : > { %v1454_v55 = vpop.f32.mrb[14].mxu1 }
 0xce3   : > { %v1455_v56 = vadd.f32 %v2325_v54, %v1454_v55  ;;  %v2545_v58 = vpop.f32.mrb[15].mxu1  ;;  %v2343_v54 = vld [vmem:[%s3408_s9 + $0x28] sm:$0xff]  ;;  %v2344_v55 = vld [vmem:[%s3408_s9 + $0x30] sm:$0xff] }
 0xce4   : > { %v2345_v58 = vld [vmem:[%s3408_s9 + $0x38] sm:$0xff] }
 0xce5   : > { %v3211_v60 = vadd.f32 %v1455_v56, %v3117_v57  ;;  %v2329_v57 = vld [vmem:[%s3406_s7 + $0x28] sm:$0xff]  ;;  %v2719_v56 = vpack.c.bf16 %v2343_v54, %v2342_v53 }
 0xce6   : > { %v2713_v4 = vpack.c.bf16 %v2329_v57, %v2328_v2 }
 0xce7   : > { %v1461_v61 = vsel %vm718_vm2, %v3211_v60, 0.0 }
 0xce8   : > { %1462 = vadd.xlane.f32.xlu0 %v1461_v61  ;;  %2714 = vmatpush3.bf16.msra.mxu1 %v2713_v4  ;;  %v2722_v61 = vpack.c.bf16 %v2345_v58, %v2344_v55 }
 0xce9   : > { %2715 = vmatprep.subr.bf16.mxu1 %v2810_v3 }
 0xcec   : > { %2717 = vmatpush3.bf16.msra.mxu1 %v2716_v7 }
 0xced   : > { %2718 = vmatprep.subr.bf16.mxu1 %v2810_v3 }
 0xd75   : > { %v1463_v62 = vpop.xlane.xlu0 %1462 }
 0xd76   : > { %v1464_v63 = vmul.f32 0.03125, %v1463_v62 }
 0xd78   : > { %v1465_v0 = vsub.f32 %v3211_v60, %v1464_v63 }
 0xd7a   : > { %v1466_v1 = vmul.f32 %v1465_v0, %v1465_v0 }
 0xd7c   : > { %v1467_v47 = vsel %vm718_vm2, %v1466_v1, 0.0 }
 0xd7d   : > { %1468 = vadd.xlane.f32.xlu0 %v1467_v47  ;;  %v2346_v47 = vld [vmem:[%s3409_s10 + $0x1] ss:$0 sm:$0xff] }
 0xe0a   : > { %v1469_v8 = vpop.xlane.xlu0 %1468 }
 0xe0b   : > { %v1470_v9 = vmul.f32 0.03125, %v1469_v8 }
 0xe0d   : > { %v1471_v10 = vadd.f32 1e-06, %v1470_v9 }
 0xe0f   : > { %2786 = vrsqrt.f32 %v1471_v10 }
 0xe19   : > { %v2787_v11 = vpop.eup %2786 }
 0xe1a   : > { %v1473_v13 = vmul.f32 %v2787_v11, %v1465_v0  ;;  %v2350_v11 = vld [vmem:[%s3412_s13 + $0x20] sm:$0xff] }
 0xe1c   : > { %v1478_v15 = vmul.f32 %v2326_v12, %v1473_v13  ;;  %v2352_v13 = vld [vmem:[%s3412_s13 + $0x30] sm:$0xff] }
 0xe1e   : > { %v1483_v16 = vadd.f32 %v2327_v14, %v1478_v15  ;;  %v2353_v14 = vld [vmem:[%s3412_s13 + $0x38] sm:$0xff] }
 0xe1f   : > { %v2728_v15 = vpack.c.bf16 %v2353_v14, %v2352_v13 }
 0xe20   : > { %2555 = vmatmul.mubr.msk.f32.vlgmr.msra.gmra.mrb[16].mxu1 %vm752_vm4, %v1483_v16  ;;  %v2356_v16 = vld [vmem:[%s3414_s15 + $0x80] sm:$0xff] }
 0xe21   : > { %2585 = vmatprep.mubr.msk.f32.mxu1 %vm2811_vm3, %v2812_v59  ;;  %2720 = vmatpush3.bf16.msra.mxu1 %v2719_v56 }
 0xe22   : > { %2721 = vmatprep.subr.bf16.mxu1 %v2810_v3 }
 0xe25   : > { %2723 = vmatpush3.bf16.msra.mxu1 %v2722_v61 }
 0xe26   : > { %2724 = vmatprep.subr.bf16.mxu1 %v2810_v3 }
 0xef3   : > { %v1563_v18 = vpop.f32.mrb[16].mxu1 }
 0xef4   : > { %v1564_v19 = vadd.f32 %v2332_v17, %v1563_v18  ;;  %v2556_v20 = vpop.f32.mrb[17].mxu1  ;;  %v2357_v17 = vld [vmem:[%s3414_s15 + $0x88] sm:$0xff] }
 0xef5   : > { %v2731_v18 = vpack.c.bf16 %v2357_v17, %v2356_v16 }
 0xef6   : > { %1568 = vrot.lane.b32.xlu0 %v1564_v19, %s2814_s23  ;;  %s3434_s23 = smov 48  }
 0xefa   : > { %1656 = vrot.lane.b32.xlu0 %v1564_v19, %s2813_s2  ;;  %s3433_s2 = smov 80  }
 0xefe   : > { %1733 = vrot.lane.b32.xlu0 %v1564_v19, %s3432_s3 }
 0xf68   : > { %v1569_v21 = vpop.permute.xlu0 %1568 }
 0xf69   : > { %2558 = vmatpush3.xpose.msk.msra.mxu0 %vm829_vm5, %v1569_v21 }
 0xf6a   : > { %2562 = vmatprep.subr.mxu0 %v2812_v59 }
 0xf6c   : > { %2560 = vmatmul.mubr.msk.f32.vlgmr.msra.gmra.mrb[2].mxu0 %vm829_vm5, %v1564_v19  ;;  %v1657_v22 = vpop.permute.xlu0 %1656 }
 0xf6d   : > { %2563 = vmatpush3.msk.msra.mxu0 %vm923_vm6, %v1657_v22  ;;  %2564 = vmatprep.mubr.msk.f32.mxu0 %vm2811_vm3, %v2812_v59 }
 0xf6e   : > { %2567 = vmatprep.subr.mxu0 %v2812_v59 }
 0xf70   : > { %v1734_v36 = vpop.permute.xlu0 %1733 }
0x103f   : > { %v1640_v23 = vpop.f32.mrb[2].mxu0 }
0x1040   : > { %v1644_v24 = vmul.f32 0.25, %v1640_v23  ;;  %v2561_v25 = vpop.f32.mrb[3].mxu0  ;;  %v2348_v23 = vld [vmem:[%s3410_s11 + $0x1] ss:$0 sm:$0xff] }
0x1041   : > { %v2349_v25 = vld [vmem:[%s3411_s12 + $0x1] ss:$0 sm:$0xff] }
0x1042   : > { %v1645_v26 = vsel %vm905_vm7, %v1644_v24, -inf }
0x1043   : > { %1646 = vmax.xlane.f32.xlu1 %v1645_v26 }
0x10d0   : > { %v1647_v27 = vpop.xlane.xlu1 %1646 }
0x10d1   : > { %v1648_v28 = vsub.f32 %v1644_v24, %v1647_v27 }
0x10d3   : > { %v1649_v29 = vmul.f32 1.442695, %v1648_v28  ;;  %v2358_v28 = vld [vmem:[%s3414_s15 + $0x90] sm:$0xff] }
0x10d5   : > { %2788 = vpow2.f32 %v1649_v29  ;;  %v2359_v29 = vld [vmem:[%s3414_s15 + $0x98] sm:$0xff] }
0x10df   : > { %v2789_v30 = vpop.eup %2788 }
0x10e0   : > { %v1651_v31 = vsel %vm905_vm7, %v2789_v30, 0.0 }
0x10e1   : > { %1652 = vadd.xlane.f32.xlu1 %v1651_v31  ;;  %v2360_v31 = vld [vmem:[%s3414_s15 + $0xa0] sm:$0xff] }
0x10f2   : > { %1735 = vrot.lane.b32.xlu1 %v1564_v19, %s3433_s2 }
0x116e   : > { %v1653_v32 = vpop.xlane.xlu1 %1652 }
0x116f   : > { %2790 = vrcp.f32 %v1653_v32  ;;  %v2361_v32 = vld [vmem:[%s3414_s15 + $0xa8] sm:$0xff] }
0x1172   : > { %v1736_v35 = vpop.permute.xlu1 %1735 }
0x1179   : > { %v2791_v33 = vpop.eup %2790 }
0x117a   : > { %v1655_v34 = vmul.f32 %v2791_v33, %v2789_v30  ;;  %v2734_v30 = vpack.c.bf16 %v2359_v29, %v2358_v28  ;;  %v2737_v33 = vpack.c.bf16 %v2361_v32, %v2360_v31 }
0x117c   : > { %2565 = vmatmul.mubr.msk.f32.vlgmr.msra.gmra.mrb[4].mxu0 %vm919_vm8, %v1655_v34  ;;  %v2362_v34 = vld [vmem:[%s3414_s15 + $0xb0] sm:$0xff] }
0x117d   : > { %2568 = vmatpush3.xpose.msk.msra.mxu0 %vm829_vm5, %v1736_v35  ;;  %2569 = vmatprep.mubr.msk.f32.mxu0 %vm2811_vm3, %v2812_v59  ;;  %v2363_v35 = vld [vmem:[%s3414_s15 + $0xb8] sm:$0xff] }
0x117e   : > { %2572 = vmatprep.subr.mxu0 %v2812_v59 }
0x1180   : > { %2570 = vmatmul.mubr.msk.f32.vlgmr.msra.gmra.mrb[6].mxu0 %vm829_vm5, %v1734_v36  ;;  %v2740_v36 = vpack.c.bf16 %v2363_v35, %v2362_v34 }
0x1181   : > { %2574 = vmatprep.mubr.msk.f32.mxu0 %vm2811_vm3, %v2812_v59 }
0x124f   : > { %v1729_v37 = vpop.f32.mrb[4].mxu0 }
0x1250   : > { %v2566_v38 = vpop.f32.mrb[5].mxu0 }
0x1251   : > { %v2365_v38 = vld [vmem:[%s3414_s15 + $0xc8] sm:$0xff] }
0x1253   : > { %v1807_v39 = vpop.f32.mrb[6].mxu0 }
0x1254   : > { %v1811_v40 = vmul.f32 0.25, %v1807_v39  ;;  %v2571_v41 = vpop.f32.mrb[7].mxu0  ;;  %v2366_v39 = vld [vmem:[%s3414_s15 + $0xd0] sm:$0xff] }
0x1255   : > { %v2367_v41 = vld [vmem:[%s3414_s15 + $0xd8] sm:$0xff] }
0x1256   : > { %v1812_v42 = vsel %vm905_vm7, %v1811_v40, -inf }
0x1257   : > { %1813 = vmax.xlane.f32.xlu0 %v1812_v42  ;;  %v2746_v42 = vpack.c.bf16 %v2367_v41, %v2366_v39 }
0x126d   : > { %1823 = vrot.lane.b32.xlu0 %v1564_v19, %s3434_s23 }
0x12e4   : > { %v1814_v43 = vpop.xlane.xlu0 %1813 }
0x12e5   : > { %v1815_v44 = vsub.f32 %v1811_v40, %v1814_v43  ;;  %v2368_v43 = vld [vmem:[%s3414_s15 + $0xe0] sm:$0xff] }
0x12e7   : > { %v1816_v45 = vmul.f32 1.442695, %v1815_v44  ;;  %v2369_v44 = vld [vmem:[%s3414_s15 + $0xe8] sm:$0xff] }
0x12e8   : > { %v1824_v46 = vpop.permute.xlu0 %1823 }
0x12e9   : > { %2792 = vpow2.f32 %v1816_v45  ;;  %2573 = vmatpush3.msk.msra.mxu0 %vm923_vm6, %v1824_v46  ;;  %v2749_v45 = vpack.c.bf16 %v2369_v44, %v2368_v43  ;;  %v2370_v46 = vld [vmem:[%s3414_s15 + $0xf0] sm:$0xff] }
0x12ea   : > { %2730 = vmatprep.subr.bf16.mxu0 %v2810_v3 }
0x12f3   : > { %v2793_v48 = vpop.eup %2792 }
0x12f4   : > { %v1818_v49 = vsel %vm905_vm7, %v2793_v48, 0.0 }
0x12f5   : > { %1819 = vadd.xlane.f32.xlu1 %v1818_v49 }
0x1382   : > { %v1820_v50 = vpop.xlane.xlu1 %1819 }
0x1383   : > { %2794 = vrcp.f32 %v1820_v50  ;;  %v2354_v50 = vld [vmem:[%s3413_s14 + $0x1] ss:$0 sm:$0xff] }
0x138d   : > { %v2795_v51 = vpop.eup %2794 }
0x138e   : > { %v1822_v52 = vmul.f32 %v2795_v51, %v2793_v48  ;;  %v2371_v48 = vld [vmem:[%s3414_s15 + $0xf8] sm:$0xff] }
0x138f   : > { %v2752_v49 = vpack.c.bf16 %v2371_v48, %v2370_v46 }
0x1390   : > { %2575 = vmatmul.mubr.msk.f32.vlgmr.msra.gmra.mrb[8].mxu0 %vm919_vm8, %v1822_v52 }
0x1391   : > { %2631 = vmatprep.mubr.msk.f32.mxu0 %vm2811_vm3, %v2812_v59  ;;  %2732 = vmatpush3.bf16.msra.mxu0 %v2731_v18 }
0x1392   : > { %2733 = vmatprep.subr.bf16.mxu0 %v2810_v3 }
0x1395   : > { %2735 = vmatpush3.bf16.msra.mxu0 %v2734_v30 }
0x1396   : > { %2736 = vmatprep.subr.bf16.mxu0 %v2810_v3 }
0x1399   : > { %2738 = vmatpush3.bf16.msra.mxu0 %v2737_v33 }
0x139a   : > { %2739 = vmatprep.subr.bf16.mxu0 %v2810_v3 }
0x139d   : > { %2741 = vmatpush3.bf16.msra.mxu0 %v2740_v36 }
0x139e   : > { %2742 = vmatprep.subr.bf16.mxu0 %v2810_v3 }
0x1463   : > { %v1896_v62 = vpop.f32.mrb[8].mxu0 }
0x1464   : > { %1901 = vrot.lane.b32.xlu1 %v1896_v62, %s3435_s25  ;;  %v2576_v63 = vpop.f32.mrb[9].mxu0 }
0x14d6   : > { %v1902_v0 = vpop.permute.xlu1 %1901 }
0x14d7   : > { %v1904_v1 = vsel %vm829_vm5, %v1729_v37, %v1902_v0  ;;  %v2364_v37 = vld [vmem:[%s3414_s15 + $0xc0] sm:$0xff] }
0x14d8   : > { %2586 = vmatmul.mubr.msk.f32.vlgmr.msra.gmra.mrb[18].mxu1 %vm752_vm4, %v1904_v1  ;;  %v2743_v40 = vpack.c.bf16 %v2365_v38, %v2364_v37 }
0x14d9   : > { %2596 = vmatprep.mubr.msk.f32.mxu1 %vm2811_vm3, %v2812_v59 }
0x14da   : > { %2744 = vmatpush3.bf16.msra.mxu0 %v2743_v40 }
0x14db   : > { %2745 = vmatprep.subr.bf16.mxu0 %v2810_v3 }
0x14de   : > { %2747 = vmatpush3.bf16.msra.mxu0 %v2746_v42 }
0x14df   : > { %2748 = vmatprep.subr.bf16.mxu0 %v2810_v3 }
0x14e2   : > { %2750 = vmatpush3.bf16.msra.mxu0 %v2749_v45 }
0x14e3   : > { %2751 = vmatprep.subr.bf16.mxu0 %v2810_v3 }
0x14e6   : > { %2753 = vmatpush3.bf16.msra.mxu0 %v2752_v49 }
0x15ab   : > { %v1984_v2 = vpop.f32.mrb[18].mxu1 }
0x15ac   : > { %v1985_v57 = vadd.f32 %v2346_v47, %v1984_v2  ;;  %v2587_v4 = vpop.f32.mrb[19].mxu1 }
0x15ae   : > { %v3295_v5 = vadd.f32 %v1985_v57, %v3211_v60  ;;  %v2351_v60 = vld [vmem:[%s3412_s13 + $0x28] sm:$0xff] }
0x15af   : > { %v2725_v12 = vpack.c.bf16 %v2351_v60, %v2350_v11 }
0x15b0   : > { %v1991_v6 = vsel %vm718_vm2, %v3295_v5, 0.0 }
0x15b1   : > { %1992 = vadd.xlane.f32.xlu0 %v1991_v6  ;;  %2726 = vmatpush3.bf16.msra.mxu1 %v2725_v12 }
0x15b2   : > { %2727 = vmatprep.subr.bf16.mxu1 %v2810_v3  ;;  %v2372_v3 = vld [vmem:[%s3415_s16 + $0x1] ss:$0 sm:$0xff] }
0x15b5   : > { %2729 = vmatpush3.bf16.msra.mxu1 %v2728_v15  ;;  %v2374_v15 = vld [vmem:[%s3417_s18] ss:$0 sm:$0xff] }
0x163e   : > { %v1993_v7 = vpop.xlane.xlu0 %1992 }
0x163f   : > { %v1994_v8 = vmul.f32 0.03125, %v1993_v7 }
0x1641   : > { %v1995_v9 = vsub.f32 %v3295_v5, %v1994_v8 }
0x1643   : > { %v1996_v10 = vmul.f32 %v1995_v9, %v1995_v9 }
0x1645   : > { %v1997_v59 = vsel %vm718_vm2, %v1996_v10, 0.0 }
0x1646   : > { %1998 = vadd.xlane.f32.xlu1 %v1997_v59 }
0x16d3   : > { %v1999_v19 = vpop.xlane.xlu1 %1998 }
0x16d4   : > { %v2000_v20 = vmul.f32 0.03125, %v1999_v19 }
0x16d6   : > { %v2001_v21 = vadd.f32 1e-06, %v2000_v20 }
0x16d8   : > { %2796 = vrsqrt.f32 %v2001_v21 }
0x16e2   : > { %v2797_v22 = vpop.eup %2796 }
0x16e3   : > { %v2003_v24 = vmul.f32 %v2797_v22, %v1995_v9 }
0x16e5   : > { %v2008_v26 = vmul.f32 %v2348_v23, %v2003_v24 }
0x16e7   : > { %v2013_v27 = vadd.f32 %v2349_v25, %v2008_v26 }
0x16e9   : > { %2597 = vmatmul.mubr.msk.f32.vlgmr.msra.gmra.mrb[20].mxu1 %vm752_vm4, %v2013_v27 }
0x17bc   : > { %v2093_v51 = vpop.f32.mrb[20].mxu1 }
0x17bd   : > { %v2094_v52 = vadd.f32 %v2354_v50, %v2093_v51  ;;  %v2598_v53 = vpop.f32.mrb[21].mxu1 }
0x17bf   : > { %v2097_v54 = vmul.f32 %v2094_v52, %v2094_v52 }
0x17c1   : > { %v2098_v55 = vmul.f32 %v2097_v54, %v2094_v52 }
0x17c3   : > { %v2099_v56 = vmul.f32 0.044715, %v2098_v55 }
0x17c5   : > { %v2100_v58 = vadd.f32 %v2099_v56, %v2094_v52 }
0x17c7   : > { %v2101_v61 = vmul.f32 0.7978846, %v2100_v58 }
0x17c9   : > { %2798 = vtanh.f32 %v2101_v61 }
0x17d3   : > { %v2799_v62 = vpop.eup %2798 }
0x17d4   : > { %v2103_v63 = vadd.f32 1.0, %v2799_v62 }
0x17d6   : > { %v2104_v0 = vmul.f32 0.5, %v2103_v63 }
0x17d8   : > { %v2105_v1 = vmul.f32 %v2104_v0, %v2094_v52 }
0x17da   : > { %2632 = vmatmul.mubr.f32.vlgmr.msra.gmra.mrb[10].mxu0 %v2105_v1 }
0x18ad   : > { %v2194_v47 = vpop.f32.mrb[10].mxu0 }
0x18ae   : > { %v2195_v2 = vadd.f32 %v2372_v3, %v2194_v47  ;;  %v2633_v57 = vpop.f32.mrb[11].mxu0 }
0x18b0   : > { %v2198_v4 = vadd.f32 %v2195_v2, %v3295_v5  ;;  %v2373_v5 = vld [vmem:[%s3416_s17] ss:$0 sm:$0xff] }
0x18b2   : > { %v2201_v6 = vsel %vm718_vm2, %v2198_v4, 0.0 }
0x18b3   : > { %2202 = vadd.xlane.f32.xlu0 %v2201_v6 }
0x1940   : > { %v2203_v7 = vpop.xlane.xlu0 %2202 }
0x1941   : > { %v2204_v8 = vmul.f32 0.03125, %v2203_v7 }
0x1943   : > { %v2205_v9 = vsub.f32 %v2198_v4, %v2204_v8 }
0x1945   : > { %v2206_v10 = vmul.f32 %v2205_v9, %v2205_v9 }
0x1947   : > { %v2207_v59 = vsel %vm718_vm2, %v2206_v10, 0.0 }
0x1948   : > { %2208 = vadd.xlane.f32.xlu0 %v2207_v59 }
0x19d5   : > { %v2209_v11 = vpop.xlane.xlu0 %2208 }
0x19d6   : > { %v2210_v60 = vmul.f32 0.03125, %v2209_v11 }
0x19d8   : > { %v2211_v12 = vadd.f32 1e-06, %v2210_v60 }
0x19da   : > { %2800 = vrsqrt.f32 %v2211_v12 }
0x19e4   : > { %v2801_v13 = vpop.eup %2800 }
0x19e5   : > { %v2213_v14 = vmul.f32 %v2801_v13, %v2205_v9 }
0x19e7   : > { %v2220_v16 = vmul.f32 %v2373_v5, %v2213_v14 }
0x19e9   : > { %v2227_v17 = vadd.f32 %v2374_v15, %v2220_v16 }
0x19eb   : > { %v2229_v18 = vrot.slane %v2227_v17, 1 }
0x19ed   : > { %v2232_v19 = vsel %vm2231_vm9, %v2229_v18, 0.0 }
0x19ee   : > { %v2233_v20 = vrot.slane %v2232_v19, 4 }
0x19f0   : > { %v2234_v21 = vadd.f32 %v2233_v20, %v2232_v19 }
0x19f2   : > { %v2235_v22 = vrot.slane %v2234_v21, 2 }
0x19f4   : > { %v2236_v23 = vadd.f32 %v2235_v22, %v2234_v21 }
0x19f6   : > { %v2237_v24 = vrot.slane %v2236_v23, 1 }
0x19f8   : > { %v2238_v25 = vadd.f32 %v2237_v24, %v2236_v23 }
0x19fa   : > { %v2240_v26 = vmul.f32 0.25, %v2238_v25 }
0x19fc   : > { %v2241_v27 = vsel %vm712_vm1, %v2227_v17, %v2240_v26 }
0x19fd   : > { %2243 = vst.msk [vmem:[%s600_s22] sm:$0x3] %vm2242_vm10, %v2241_v27 }
0x19fe PF: > { %s29_s0 = sadd.s32 1, %s2808_s0  }
0x19ff   : > { %p26_p4 = scmp.ge.s32.totalorder %s29_s0, 4  }
0x1a01   :  { %28 = sbr.rel (!%p26_p4) target bundleno = 5 (0x5), region = 130 }

</bundles_post_ra>
